<compile_context>
chip_gen: v7x
topology: tpu7x:2x2x1
jax: 0.10.0
libtpu: 0.0.40
codegen_flags: <defaults>
</compile_context>

<pallas_src>
import math
import jax
import jax.numpy as jnp
from jax.experimental import pallas as pl
from jax.experimental.pallas import tpu as pltpu

# --- model dimensions (small, consistent with the module's forward) ---
B, S, H = 2, 8, 32          # batch, seq, hidden
NH, DH = 4, 8               # heads, head_dim (H == NH * DH)
I = 4 * H                   # intermediate_size = 128
NUM_LAYERS = 2
LN_EPS = 1e-12
ROWS = B * S                # 16 token rows processed together

# static lane offsets inside the per-layer weight slab (rows 0:H)
_OFF_QKV = 0                # Wqkv (H, 3H)  lanes   0: 96   (scale folded into Q cols)
_OFF_WO = 3 * H             # Wo   (H, H)   lanes  96:128
_OFF_WI = 4 * H             # Wi   (H, I)   lanes 128:256
_OFF_W2T = 4 * H + I        # W2^T (H, I)   lanes 256:384   (lane-dense)
SLAB_W = 4 * H + 2 * I      # 384 lanes
SLAB_R = H + 8              # 40 rows = 32 weight rows + 8 bias/LN rows


def _layernorm(x, gamma, beta):
    mu = jnp.mean(x, axis=-1, keepdims=True)
    var = jnp.mean((x - mu) ** 2, axis=-1, keepdims=True)   # biased var (PyTorch LN)
    return (x - mu) * jax.lax.rsqrt(var + LN_EPS) * gamma + beta


def bert_encoder_kernel(x_ref, mask_ref, slab_ref, out_ref):
    # Whole batch in one invocation; flatten to token rows (16 sublanes/matmul).
    x = x_ref[...].astype(jnp.float32).reshape(ROWS, H)
    # Additive mask (B,S) -> broadcast ONCE over query positions, hoisted.
    maskb = jnp.broadcast_to(mask_ref[...].astype(jnp.float32)[:, None, :], (B, S, S))

    for l in range(NUM_LAYERS):               # static unroll over encoder layers
        # --- unpack the single lane-dense per-layer slab (static ref slices) ---
        wqkv = slab_ref[l, 0:H, _OFF_QKV:_OFF_QKV + 3 * H]   # (32, 96)
        wo = slab_ref[l, 0:H, _OFF_WO:_OFF_WO + H]           # (32, 32)
        wi = slab_ref[l, 0:H, _OFF_WI:_OFF_WI + I]           # (32, 128)
        w2t = slab_ref[l, 0:H, _OFF_W2T:_OFF_W2T + I]        # (32, 128)  = W2^T
        vec = slab_ref[l, H:SLAB_R, 0:I]                     # (8, 128) bias/LN rows
        bqkv = vec[0:1, :3 * H]
        bi = vec[1:2, :I]
        bo = vec[2:3, :H]
        g1, be1 = vec[3:4, :H], vec[4:5, :H]
        b2 = vec[5:6, :H]
        g2, be2 = vec[6:7, :H], vec[7:8, :H]

        # --- BertSelfAttention: fused QKV projection (single MXU push).
        # 1/sqrt(DH) is pre-folded into the Q columns/bias, so no score scaling.
        qkv = jnp.dot(x, wqkv, preferred_element_type=jnp.float32) + bqkv   # (16, 96)

        # Per-head attention batched over the batch dim (3-D dot_generals).
        # TODO(synk): a fully (B*NH)-batched formulation removes the 12 lane
        # slices but needs minor-dim reshapes/transposes on 8-lane data whose
        # relayout cost matches what it saves at this size; MXU push count is
        # unchanged, so the per-head unroll is kept.
        ctx_heads = []
        for h in range(NH):                   # static unroll, NH=4
            lo = h * DH
            qh = qkv[:, lo:lo + DH].reshape(B, S, DH)
            kh = qkv[:, H + lo:H + lo + DH].reshape(B, S, DH)
            vh = qkv[:, 2 * H + lo:2 * H + lo + DH].reshape(B, S, DH)
            s = jnp.einsum('bld,brd->blr', qh, kh,
                           preferred_element_type=jnp.float32) + maskb
            m = jnp.max(s, axis=-1, keepdims=True)
            e = jnp.exp(s - m)
            p = e * pl.reciprocal(jnp.sum(e, axis=-1, keepdims=True), approx=True)
            ctx_heads.append(
                jnp.einsum('blr,brd->bld', p, vh,
                           preferred_element_type=jnp.float32).reshape(ROWS, DH))
        # Lane-concatenate head contexts, then ONE Wo matmul (was 4 small pushes).
        ctx = jnp.concatenate(ctx_heads, axis=1)                            # (16, 32)
        attn = jnp.dot(ctx, wo, preferred_element_type=jnp.float32) + bo

        # --- BertSelfOutput: dense(+bias) + residual + LayerNorm ---
        h1 = _layernorm(attn + x, g1, be1)

        # --- BertIntermediate + BertOutput: FFN (gelu_new) + residual + LN ---
        inter = jax.nn.gelu(jnp.dot(h1, wi, preferred_element_type=jnp.float32) + bi,
                            approximate=True)
        # W2 stored transposed (32,128) lane-dense; contract its dim 1.
        ffn = jax.lax.dot_general(inter, w2t, (((1,), (1,)), ((), ())),
                                  preferred_element_type=jnp.float32) + b2
        x = _layernorm(ffn + h1, g2, be2)

    # Lane-sparse (B,S,32) store kept: at 512 elements an in-kernel cross-lane
    # reshuffle to a lane-dense slab would cost more than the ~4 masked vst ops.
    out_ref[...] = x.reshape(B, S, H).astype(out_ref.dtype)


def bert_encoder(hidden_states, attention_mask, slab):
    # Single invocation, no grid: every operand is a whole-array VMEM block
    # (total resident working set ~130 KB, far under VMEM on v5e/v6e/v7x, so
    # no vmem_limit tuning).  Per perf guidance: do NOT split over v7x's two
    # TensorCores at B*S=16 rows; revisit only when >=256 token rows/launch.
    # TODO(synk): for throughput workloads, batch many sequences per launch
    # (>=128/256 token rows) — the single biggest roofline lever if allowed.
    vmem = lambda: pl.BlockSpec(memory_space=pltpu.MemorySpace.VMEM)
    mask2d = attention_mask.reshape(B, S)     # squeeze (B,1,S) -> (B,S) before DMA
    return pl.pallas_call(
        bert_encoder_kernel,
        out_shape=jax.ShapeDtypeStruct((B, S, H), jnp.float32),
        in_specs=[vmem(), vmem(), vmem()],
        out_specs=vmem(),
    )(hidden_states, mask2d, slab)


# ---------------------------- parameter init & packing ----------------------------
def init_layer_params(key):
    ks = jax.random.split(key, 6)

    def w(k, shape):
        return jax.random.normal(k, shape, jnp.float32) * 0.02

    wq = w(ks[0], (H, H)); bq = jnp.zeros((1, H), jnp.float32)
    wk = w(ks[1], (H, H)); bk = jnp.zeros((1, H), jnp.float32)
    wv = w(ks[2], (H, H)); bv = jnp.zeros((1, H), jnp.float32)
    wo = w(ks[3], (H, H)); bo = jnp.zeros((1, H), jnp.float32)
    g1 = jnp.ones((1, H), jnp.float32); be1 = jnp.zeros((1, H), jnp.float32)
    wi = w(ks[4], (H, I)); bi = jnp.zeros((1, I), jnp.float32)
    w2 = w(ks[5], (I, H)); b2 = jnp.zeros((1, H), jnp.float32)
    g2 = jnp.ones((1, H), jnp.float32); be2 = jnp.zeros((1, H), jnp.float32)
    return (wq, bq, wk, bk, wv, bv, wo, bo, g1, be1, wi, bi, w2, b2, g2, be2)


def pack_params(params):
    """Pack all per-layer params into ONE (L, 40, 384) lane-dense slab.

    Rows 0:32  = [ Wqkv (scale folded into Q) | Wo | Wi | W2^T ] along lanes.
    Rows 32:40 = bias / LayerNorm vectors in lanes 0:128.
    One-time weight transform at init (not per-call wrapper work).
    """
    scale = 1.0 / math.sqrt(DH)
    slabs = []
    for p in params:
        (wq, bq, wk, bk, wv, bv, wo, bo, g1, be1, wi, bi, w2, b2, g2, be2) = p
        wqkv = jnp.concatenate([wq * scale, wk, wv], axis=1)          # (32, 96)
        wrows = jnp.concatenate([wqkv, wo, wi, w2.T], axis=1)         # (32, 384)
        vec = jnp.zeros((8, SLAB_W), jnp.float32)
        vec = vec.at[0, :3 * H].set(jnp.concatenate([bq[0] * scale, bk[0], bv[0]]))
        vec = vec.at[1, :I].set(bi[0])
        vec = vec.at[2, :H].set(bo[0])
        vec = vec.at[3, :H].set(g1[0])
        vec = vec.at[4, :H].set(be1[0])
        vec = vec.at[5, :H].set(b2[0])
        vec = vec.at[6, :H].set(g2[0])
        vec = vec.at[7, :H].set(be2[0])
        slabs.append(jnp.concatenate([wrows, vec], axis=0))           # (40, 384)
    return jnp.stack(slabs)                                           # (L, 40, 384)


# ---------------------------- pure-JAX reference ----------------------------
def _ref_layer(x, mask, p):
    (wq, bq, wk, bk, wv, bv, wo, bo, g1, be1, wi, bi, w2, b2, g2, be2) = p
    q = x @ wq + bq
    k = x @ wk + bk
    v = x @ wv + bv
    q = q.reshape(B, S, NH, DH).transpose(0, 2, 1, 3)
    k = k.reshape(B, S, NH, DH).transpose(0, 2, 1, 3)
    v = v.reshape(B, S, NH, DH).transpose(0, 2, 1, 3)
    scores = jnp.einsum('bhld,bhrd->bhlr', q, k) / math.sqrt(DH)
    scores = scores + mask[:, :, None, :]          # (B,1,1,S) broadcast
    probs = jax.nn.softmax(scores, axis=-1)
    ctx = jnp.einsum('bhlr,bhrd->bhld', probs, v).transpose(0, 2, 1, 3).reshape(B, S, H)
    attn = ctx @ wo + bo
    h1 = _layernorm(attn + x, g1, be1)
    inter = jax.nn.gelu(h1 @ wi + bi, approximate=True)
    ffn = inter @ w2 + b2
    return _layernorm(ffn + h1, g2, be2)


def _ref_encoder(x, mask, params):
    for p in params:
        x = _ref_layer(x, mask, p)
    return x


if __name__ == "__main__":
    key = jax.random.PRNGKey(0)
    k_x, k_p = jax.random.split(key)

    hidden_states = jax.random.normal(k_x, (B, S, H), jnp.float32)
    # Additive extended attention mask (0 = keep, large negative = masked); all kept.
    attention_mask = jnp.zeros((B, 1, S), jnp.float32)

    params = [init_layer_params(jax.random.fold_in(k_p, l)) for l in range(NUM_LAYERS)]
    slab = pack_params(params)

    out = bert_encoder(hidden_states, attention_mask, slab)
    out = jax.block_until_ready(out)

    ref = _ref_encoder(hidden_states, attention_mask, params)
    assert out.shape == (B, S, H)
    assert jnp.allclose(out, ref, atol=2e-3, rtol=2e-3), "mismatch vs pure-JAX reference"

    print("KERNEL_OK")
</pallas_src>

<mosaic_0001>
module attributes {stable_mosaic.version = 11 : i64} {
  func.func @bert_encoder_kernel(%arg0: memref<2x8x32xf32, #tpu.memory_space<vmem>>, %arg1: memref<2x8xf32, #tpu.memory_space<vmem>>, %arg2: memref<2x40x384xf32, #tpu.memory_space<vmem>>, %arg3: memref<2x8x32xf32, #tpu.memory_space<vmem>>) attributes {dimension_semantics = [], scalar_prefetch = 0 : i64, scratch_operands = 0 : i64, tpu.core_type = #tpu.core_type<tc>} {
    %c0 = arith.constant 0 : index
    %c0_0 = arith.constant 0 : index
    %c0_1 = arith.constant 0 : index
    %0 = vector.load %arg0[%c0, %c0_0, %c0_1] : memref<2x8x32xf32, #tpu.memory_space<vmem>>, vector<2x8x32xf32>
    %1 = vector.shape_cast %0 : vector<2x8x32xf32> to vector<16x32xf32>
    %c0_2 = arith.constant 0 : index
    %c0_3 = arith.constant 0 : index
    %2 = vector.load %arg1[%c0_2, %c0_3] : memref<2x8xf32, #tpu.memory_space<vmem>>, vector<2x8xf32>
    %3 = vector.shape_cast %2 : vector<2x8xf32> to vector<2x1x8xf32>
    %4 = vector.shape_cast %3 : vector<2x1x8xf32> to vector<2x1x8xf32>
    %5 = vector.broadcast %4 : vector<2x1x8xf32> to vector<2x8x8xf32>
    %c0_4 = arith.constant 0 : index
    %c0_5 = arith.constant 0 : index
    %c0_6 = arith.constant 0 : index
    %6 = vector.load %arg2[%c0_4, %c0_5, %c0_6] : memref<2x40x384xf32, #tpu.memory_space<vmem>>, vector<1x32x96xf32>
    %7 = vector.shape_cast %6 : vector<1x32x96xf32> to vector<32x96xf32>
    %c0_7 = arith.constant 0 : index
    %c0_8 = arith.constant 0 : index
    %c96 = arith.constant 96 : index
    %8 = vector.load %arg2[%c0_7, %c0_8, %c96] : memref<2x40x384xf32, #tpu.memory_space<vmem>>, vector<1x32x32xf32>
    %9 = vector.shape_cast %8 : vector<1x32x32xf32> to vector<32x32xf32>
    %c0_9 = arith.constant 0 : index
    %c0_10 = arith.constant 0 : index
    %c128 = arith.constant 128 : index
    %10 = vector.load %arg2[%c0_9, %c0_10, %c128] : memref<2x40x384xf32, #tpu.memory_space<vmem>>, vector<1x32x128xf32>
    %11 = vector.shape_cast %10 : vector<1x32x128xf32> to vector<32x128xf32>
    %c0_11 = arith.constant 0 : index
    %c0_12 = arith.constant 0 : index
    %c256 = arith.constant 256 : index
    %12 = vector.load %arg2[%c0_11, %c0_12, %c256] : memref<2x40x384xf32, #tpu.memory_space<vmem>>, vector<1x32x128xf32>
    %13 = vector.shape_cast %12 : vector<1x32x128xf32> to vector<32x128xf32>
    %c0_13 = arith.constant 0 : index
    %c32 = arith.constant 32 : index
    %c0_14 = arith.constant 0 : index
    %14 = vector.load %arg2[%c0_13, %c32, %c0_14] : memref<2x40x384xf32, #tpu.memory_space<vmem>>, vector<1x8x128xf32>
    %15 = vector.shape_cast %14 : vector<1x8x128xf32> to vector<8x128xf32>
    %16 = vector.extract_strided_slice %15 {offsets = [0, 0], sizes = [1, 96], strides = [1, 1]} : vector<8x128xf32> to vector<1x96xf32>
    %17 = vector.extract_strided_slice %15 {offsets = [1, 0], sizes = [1, 128], strides = [1, 1]} : vector<8x128xf32> to vector<1x128xf32>
    %18 = vector.extract_strided_slice %15 {offsets = [2, 0], sizes = [1, 32], strides = [1, 1]} : vector<8x128xf32> to vector<1x32xf32>
    %19 = vector.extract_strided_slice %15 {offsets = [3, 0], sizes = [1, 32], strides = [1, 1]} : vector<8x128xf32> to vector<1x32xf32>
    %20 = vector.extract_strided_slice %15 {offsets = [4, 0], sizes = [1, 32], strides = [1, 1]} : vector<8x128xf32> to vector<1x32xf32>
    %21 = vector.extract_strided_slice %15 {offsets = [5, 0], sizes = [1, 32], strides = [1, 1]} : vector<8x128xf32> to vector<1x32xf32>
    %22 = vector.extract_strided_slice %15 {offsets = [6, 0], sizes = [1, 32], strides = [1, 1]} : vector<8x128xf32> to vector<1x32xf32>
    %23 = vector.extract_strided_slice %15 {offsets = [7, 0], sizes = [1, 32], strides = [1, 1]} : vector<8x128xf32> to vector<1x32xf32>
    %cst = arith.constant dense<0.000000e+00> : vector<16x96xf32>
    %24 = tpu.matmul %1, %7, %cst {dimension_numbers = #tpu.dot_dimension_numbers<[1], [0], [0], [1], [0, 0, 1, 1], [], []>} : vector<16x32xf32>, vector<32x96xf32>, vector<16x96xf32> -> vector<16x96xf32>
    %25 = vector.broadcast %16 : vector<1x96xf32> to vector<16x96xf32>
    %26 = arith.addf %24, %25 : vector<16x96xf32>
    %27 = vector.extract_strided_slice %26 {offsets = [0, 0], sizes = [16, 8], strides = [1, 1]} : vector<16x96xf32> to vector<16x8xf32>
    %28 = vector.shape_cast %27 : vector<16x8xf32> to vector<2x8x8xf32>
    %29 = vector.extract_strided_slice %26 {offsets = [0, 32], sizes = [16, 8], strides = [1, 1]} : vector<16x96xf32> to vector<16x8xf32>
    %30 = vector.shape_cast %29 : vector<16x8xf32> to vector<2x8x8xf32>
    %31 = vector.extract_strided_slice %26 {offsets = [0, 64], sizes = [16, 8], strides = [1, 1]} : vector<16x96xf32> to vector<16x8xf32>
    %32 = vector.shape_cast %31 : vector<16x8xf32> to vector<2x8x8xf32>
    "tpu.trace_start"() <{level = 10 : i32, message = "bld,brd->blr"}> : () -> ()
    %cst_15 = arith.constant dense<0.000000e+00> : vector<2x8x8xf32>
    %33 = tpu.matmul %28, %30, %cst_15 {dimension_numbers = #tpu.dot_dimension_numbers<[2], [2], [1], [1], [0, 0, 0, 1, 1, 1], [0], [0]>} : vector<2x8x8xf32>, vector<2x8x8xf32>, vector<2x8x8xf32> -> vector<2x8x8xf32>
    "tpu.trace_stop"() : () -> ()
    %34 = arith.addf %33, %5 : vector<2x8x8xf32>
    %cst_16 = arith.constant dense<0xFF800000> : vector<2x8xf32>
    %35 = vector.multi_reduction <maximumf>, %34, %cst_16 [2] : vector<2x8x8xf32> to vector<2x8xf32>
    %36 = vector.shape_cast %35 : vector<2x8xf32> to vector<2x8x1xf32>
    %37 = vector.broadcast %36 : vector<2x8x1xf32> to vector<2x8x8xf32>
    %38 = arith.subf %34, %37 : vector<2x8x8xf32>
    %39 = math.exp %38 : vector<2x8x8xf32>
    %cst_17 = arith.constant dense<0.000000e+00> : vector<2x8xf32>
    %40 = vector.multi_reduction <add>, %39, %cst_17 [2] : vector<2x8x8xf32> to vector<2x8xf32>
    %41 = vector.shape_cast %40 : vector<2x8xf32> to vector<2x8x1xf32>
    %42 = tpu.reciprocal %41 {approx = true} : vector<2x8x1xf32> -> vector<2x8x1xf32>
    %43 = vector.broadcast %42 : vector<2x8x1xf32> to vector<2x8x8xf32>
    %44 = arith.mulf %39, %43 : vector<2x8x8xf32>
    "tpu.trace_start"() <{level = 10 : i32, message = "blr,brd->bld"}> : () -> ()
    %cst_18 = arith.constant dense<0.000000e+00> : vector<2x8x8xf32>
    %45 = tpu.matmul %44, %32, %cst_18 {dimension_numbers = #tpu.dot_dimension_numbers<[2], [1], [1], [2], [0, 0, 0, 1, 1, 2], [0], [0]>} : vector<2x8x8xf32>, vector<2x8x8xf32>, vector<2x8x8xf32> -> vector<2x8x8xf32>
    "tpu.trace_stop"() : () -> ()
    %46 = vector.shape_cast %45 : vector<2x8x8xf32> to vector<16x8xf32>
    %47 = vector.extract_strided_slice %26 {offsets = [0, 8], sizes = [16, 8], strides = [1, 1]} : vector<16x96xf32> to vector<16x8xf32>
    %48 = vector.shape_cast %47 : vector<16x8xf32> to vector<2x8x8xf32>
    %49 = vector.extract_strided_slice %26 {offsets = [0, 40], sizes = [16, 8], strides = [1, 1]} : vector<16x96xf32> to vector<16x8xf32>
    %50 = vector.shape_cast %49 : vector<16x8xf32> to vector<2x8x8xf32>
    %51 = vector.extract_strided_slice %26 {offsets = [0, 72], sizes = [16, 8], strides = [1, 1]} : vector<16x96xf32> to vector<16x8xf32>
    %52 = vector.shape_cast %51 : vector<16x8xf32> to vector<2x8x8xf32>
    "tpu.trace_start"() <{level = 10 : i32, message = "bld,brd->blr"}> : () -> ()
    %cst_19 = arith.constant dense<0.000000e+00> : vector<2x8x8xf32>
    %53 = tpu.matmul %48, %50, %cst_19 {dimension_numbers = #tpu.dot_dimension_numbers<[2], [2], [1], [1], [0, 0, 0, 1, 1, 1], [0], [0]>} : vector<2x8x8xf32>, vector<2x8x8xf32>, vector<2x8x8xf32> -> vector<2x8x8xf32>
    "tpu.trace_stop"() : () -> ()
    %54 = arith.addf %53, %5 : vector<2x8x8xf32>
    %cst_20 = arith.constant dense<0xFF800000> : vector<2x8xf32>
    %55 = vector.multi_reduction <maximumf>, %54, %cst_20 [2] : vector<2x8x8xf32> to vector<2x8xf32>
    %56 = vector.shape_cast %55 : vector<2x8xf32> to vector<2x8x1xf32>
    %57 = vector.broadcast %56 : vector<2x8x1xf32> to vector<2x8x8xf32>
    %58 = arith.subf %54, %57 : vector<2x8x8xf32>
    %59 = math.exp %58 : vector<2x8x8xf32>
    %cst_21 = arith.constant dense<0.000000e+00> : vector<2x8xf32>
    %60 = vector.multi_reduction <add>, %59, %cst_21 [2] : vector<2x8x8xf32> to vector<2x8xf32>
    %61 = vector.shape_cast %60 : vector<2x8xf32> to vector<2x8x1xf32>
    %62 = tpu.reciprocal %61 {approx = true} : vector<2x8x1xf32> -> vector<2x8x1xf32>
    %63 = vector.broadcast %62 : vector<2x8x1xf32> to vector<2x8x8xf32>
    %64 = arith.mulf %59, %63 : vector<2x8x8xf32>
    "tpu.trace_start"() <{level = 10 : i32, message = "blr,brd->bld"}> : () -> ()
    %cst_22 = arith.constant dense<0.000000e+00> : vector<2x8x8xf32>
    %65 = tpu.matmul %64, %52, %cst_22 {dimension_numbers = #tpu.dot_dimension_numbers<[2], [1], [1], [2], [0, 0, 0, 1, 1, 2], [0], [0]>} : vector<2x8x8xf32>, vector<2x8x8xf32>, vector<2x8x8xf32> -> vector<2x8x8xf32>
    "tpu.trace_stop"() : () -> ()
    %66 = vector.shape_cast %65 : vector<2x8x8xf32> to vector<16x8xf32>
    %67 = vector.extract_strided_slice %26 {offsets = [0, 16], sizes = [16, 8], strides = [1, 1]} : vector<16x96xf32> to vector<16x8xf32>
    %68 = vector.shape_cast %67 : vector<16x8xf32> to vector<2x8x8xf32>
    %69 = vector.extract_strided_slice %26 {offsets = [0, 48], sizes = [16, 8], strides = [1, 1]} : vector<16x96xf32> to vector<16x8xf32>
    %70 = vector.shape_cast %69 : vector<16x8xf32> to vector<2x8x8xf32>
    %71 = vector.extract_strided_slice %26 {offsets = [0, 80], sizes = [16, 8], strides = [1, 1]} : vector<16x96xf32> to vector<16x8xf32>
    %72 = vector.shape_cast %71 : vector<16x8xf32> to vector<2x8x8xf32>
    "tpu.trace_start"() <{level = 10 : i32, message = "bld,brd->blr"}> : () -> ()
    %cst_23 = arith.constant dense<0.000000e+00> : vector<2x8x8xf32>
    %73 = tpu.matmul %68, %70, %cst_23 {dimension_numbers = #tpu.dot_dimension_numbers<[2], [2], [1], [1], [0, 0, 0, 1, 1, 1], [0], [0]>} : vector<2x8x8xf32>, vector<2x8x8xf32>, vector<2x8x8xf32> -> vector<2x8x8xf32>
    "tpu.trace_stop"() : () -> ()
    %74 = arith.addf %73, %5 : vector<2x8x8xf32>
    %cst_24 = arith.constant dense<0xFF800000> : vector<2x8xf32>
    %75 = vector.multi_reduction <maximumf>, %74, %cst_24 [2] : vector<2x8x8xf32> to vector<2x8xf32>
    %76 = vector.shape_cast %75 : vector<2x8xf32> to vector<2x8x1xf32>
    %77 = vector.broadcast %76 : vector<2x8x1xf32> to vector<2x8x8xf32>
    %78 = arith.subf %74, %77 : vector<2x8x8xf32>
    %79 = math.exp %78 : vector<2x8x8xf32>
    %cst_25 = arith.constant dense<0.000000e+00> : vector<2x8xf32>
    %80 = vector.multi_reduction <add>, %79, %cst_25 [2] : vector<2x8x8xf32> to vector<2x8xf32>
    %81 = vector.shape_cast %80 : vector<2x8xf32> to vector<2x8x1xf32>
    %82 = tpu.reciprocal %81 {approx = true} : vector<2x8x1xf32> -> vector<2x8x1xf32>
    %83 = vector.broadcast %82 : vector<2x8x1xf32> to vector<2x8x8xf32>
    %84 = arith.mulf %79, %83 : vector<2x8x8xf32>
    "tpu.trace_start"() <{level = 10 : i32, message = "blr,brd->bld"}> : () -> ()
    %cst_26 = arith.constant dense<0.000000e+00> : vector<2x8x8xf32>
    %85 = tpu.matmul %84, %72, %cst_26 {dimension_numbers = #tpu.dot_dimension_numbers<[2], [1], [1], [2], [0, 0, 0, 1, 1, 2], [0], [0]>} : vector<2x8x8xf32>, vector<2x8x8xf32>, vector<2x8x8xf32> -> vector<2x8x8xf32>
    "tpu.trace_stop"() : () -> ()
    %86 = vector.shape_cast %85 : vector<2x8x8xf32> to vector<16x8xf32>
    %87 = vector.extract_strided_slice %26 {offsets = [0, 24], sizes = [16, 8], strides = [1, 1]} : vector<16x96xf32> to vector<16x8xf32>
    %88 = vector.shape_cast %87 : vector<16x8xf32> to vector<2x8x8xf32>
    %89 = vector.extract_strided_slice %26 {offsets = [0, 56], sizes = [16, 8], strides = [1, 1]} : vector<16x96xf32> to vector<16x8xf32>
    %90 = vector.shape_cast %89 : vector<16x8xf32> to vector<2x8x8xf32>
    %91 = vector.extract_strided_slice %26 {offsets = [0, 88], sizes = [16, 8], strides = [1, 1]} : vector<16x96xf32> to vector<16x8xf32>
    %92 = vector.shape_cast %91 : vector<16x8xf32> to vector<2x8x8xf32>
    "tpu.trace_start"() <{level = 10 : i32, message = "bld,brd->blr"}> : () -> ()
    %cst_27 = arith.constant dense<0.000000e+00> : vector<2x8x8xf32>
    %93 = tpu.matmul %88, %90, %cst_27 {dimension_numbers = #tpu.dot_dimension_numbers<[2], [2], [1], [1], [0, 0, 0, 1, 1, 1], [0], [0]>} : vector<2x8x8xf32>, vector<2x8x8xf32>, vector<2x8x8xf32> -> vector<2x8x8xf32>
    "tpu.trace_stop"() : () -> ()
    %94 = arith.addf %93, %5 : vector<2x8x8xf32>
    %cst_28 = arith.constant dense<0xFF800000> : vector<2x8xf32>
    %95 = vector.multi_reduction <maximumf>, %94, %cst_28 [2] : vector<2x8x8xf32> to vector<2x8xf32>
    %96 = vector.shape_cast %95 : vector<2x8xf32> to vector<2x8x1xf32>
    %97 = vector.broadcast %96 : vector<2x8x1xf32> to vector<2x8x8xf32>
    %98 = arith.subf %94, %97 : vector<2x8x8xf32>
    %99 = math.exp %98 : vector<2x8x8xf32>
    %cst_29 = arith.constant dense<0.000000e+00> : vector<2x8xf32>
    %100 = vector.multi_reduction <add>, %99, %cst_29 [2] : vector<2x8x8xf32> to vector<2x8xf32>
    %101 = vector.shape_cast %100 : vector<2x8xf32> to vector<2x8x1xf32>
    %102 = tpu.reciprocal %101 {approx = true} : vector<2x8x1xf32> -> vector<2x8x1xf32>
    %103 = vector.broadcast %102 : vector<2x8x1xf32> to vector<2x8x8xf32>
    %104 = arith.mulf %99, %103 : vector<2x8x8xf32>
    "tpu.trace_start"() <{level = 10 : i32, message = "blr,brd->bld"}> : () -> ()
    %cst_30 = arith.constant dense<0.000000e+00> : vector<2x8x8xf32>
    %105 = tpu.matmul %104, %92, %cst_30 {dimension_numbers = #tpu.dot_dimension_numbers<[2], [1], [1], [2], [0, 0, 0, 1, 1, 2], [0], [0]>} : vector<2x8x8xf32>, vector<2x8x8xf32>, vector<2x8x8xf32> -> vector<2x8x8xf32>
    "tpu.trace_stop"() : () -> ()
    %106 = vector.shape_cast %105 : vector<2x8x8xf32> to vector<16x8xf32>
    %107 = tpu.concatenate %46, %66, %86, %106 in 1 : vector<16x8xf32>, vector<16x8xf32>, vector<16x8xf32>, vector<16x8xf32> -> vector<16x32xf32>
    %cst_31 = arith.constant dense<0.000000e+00> : vector<16x32xf32>
    %108 = tpu.matmul %107, %9, %cst_31 {dimension_numbers = #tpu.dot_dimension_numbers<[1], [0], [0], [1], [0, 0, 1, 1], [], []>} : vector<16x32xf32>, vector<32x32xf32>, vector<16x32xf32> -> vector<16x32xf32>
    %109 = vector.broadcast %18 : vector<1x32xf32> to vector<16x32xf32>
    %110 = arith.addf %108, %109 : vector<16x32xf32>
    %111 = arith.addf %110, %1 : vector<16x32xf32>
    %cst_32 = arith.constant dense<0.000000e+00> : vector<16xf32>
    %112 = vector.multi_reduction <add>, %111, %cst_32 [1] : vector<16x32xf32> to vector<16xf32>
    %113 = vector.shape_cast %112 : vector<16xf32> to vector<16x1xf32>
    %cst_33 = arith.constant 3.200000e+01 : f32
    %114 = vector.broadcast %cst_33 : f32 to vector<16x1xf32>
    %115 = arith.divf %113, %114 : vector<16x1xf32>
    %116 = vector.broadcast %115 : vector<16x1xf32> to vector<16x32xf32>
    %117 = arith.subf %111, %116 : vector<16x32xf32>
    %118 = arith.mulf %117, %117 : vector<16x32xf32>
    %cst_34 = arith.constant dense<0.000000e+00> : vector<16xf32>
    %119 = vector.multi_reduction <add>, %118, %cst_34 [1] : vector<16x32xf32> to vector<16xf32>
    %120 = vector.shape_cast %119 : vector<16xf32> to vector<16x1xf32>
    %cst_35 = arith.constant 3.200000e+01 : f32
    %121 = vector.broadcast %cst_35 : f32 to vector<16x1xf32>
    %122 = arith.divf %120, %121 : vector<16x1xf32>
    %123 = vector.broadcast %115 : vector<16x1xf32> to vector<16x32xf32>
    %124 = arith.subf %111, %123 : vector<16x32xf32>
    %cst_36 = arith.constant 9.99999996E-13 : f32
    %125 = vector.broadcast %cst_36 : f32 to vector<16x1xf32>
    %126 = arith.addf %122, %125 : vector<16x1xf32>
    %127 = math.rsqrt %126 : vector<16x1xf32>
    %128 = vector.broadcast %127 : vector<16x1xf32> to vector<16x32xf32>
    %129 = arith.mulf %124, %128 : vector<16x32xf32>
    %130 = vector.broadcast %19 : vector<1x32xf32> to vector<16x32xf32>
    %131 = arith.mulf %129, %130 : vector<16x32xf32>
    %132 = vector.broadcast %20 : vector<1x32xf32> to vector<16x32xf32>
    %133 = arith.addf %131, %132 : vector<16x32xf32>
    %cst_37 = arith.constant dense<0.000000e+00> : vector<16x128xf32>
    %134 = tpu.matmul %133, %11, %cst_37 {dimension_numbers = #tpu.dot_dimension_numbers<[1], [0], [0], [1], [0, 0, 1, 1], [], []>} : vector<16x32xf32>, vector<32x128xf32>, vector<16x128xf32> -> vector<16x128xf32>
    %135 = vector.broadcast %17 : vector<1x128xf32> to vector<16x128xf32>
    %136 = arith.addf %134, %135 : vector<16x128xf32>
    %137 = arith.mulf %136, %136 : vector<16x128xf32>
    %138 = arith.mulf %136, %137 : vector<16x128xf32>
    %cst_38 = arith.constant 4.471500e-02 : f32
    %139 = vector.broadcast %cst_38 : f32 to vector<16x128xf32>
    %140 = arith.mulf %139, %138 : vector<16x128xf32>
    %141 = arith.addf %136, %140 : vector<16x128xf32>
    %cst_39 = arith.constant 0.797884583 : f32
    %142 = vector.broadcast %cst_39 : f32 to vector<16x128xf32>
    %143 = arith.mulf %142, %141 : vector<16x128xf32>
    %144 = math.tanh %143 : vector<16x128xf32>
    %cst_40 = arith.constant 1.000000e+00 : f32
    %145 = vector.broadcast %cst_40 : f32 to vector<16x128xf32>
    %146 = arith.addf %145, %144 : vector<16x128xf32>
    %cst_41 = arith.constant 5.000000e-01 : f32
    %147 = vector.broadcast %cst_41 : f32 to vector<16x128xf32>
    %148 = arith.mulf %147, %146 : vector<16x128xf32>
    %149 = arith.mulf %136, %148 : vector<16x128xf32>
    %cst_42 = arith.constant dense<0.000000e+00> : vector<16x32xf32>
    %150 = tpu.matmul %149, %13, %cst_42 {dimension_numbers = #tpu.dot_dimension_numbers<[1], [1], [0], [0], [0, 0, 1, 0], [], []>} : vector<16x128xf32>, vector<32x128xf32>, vector<16x32xf32> -> vector<16x32xf32>
    %151 = vector.broadcast %21 : vector<1x32xf32> to vector<16x32xf32>
    %152 = arith.addf %150, %151 : vector<16x32xf32>
    %153 = arith.addf %152, %133 : vector<16x32xf32>
    %cst_43 = arith.constant dense<0.000000e+00> : vector<16xf32>
    %154 = vector.multi_reduction <add>, %153, %cst_43 [1] : vector<16x32xf32> to vector<16xf32>
    %155 = vector.shape_cast %154 : vector<16xf32> to vector<16x1xf32>
    %cst_44 = arith.constant 3.200000e+01 : f32
    %156 = vector.broadcast %cst_44 : f32 to vector<16x1xf32>
    %157 = arith.divf %155, %156 : vector<16x1xf32>
    %158 = vector.broadcast %157 : vector<16x1xf32> to vector<16x32xf32>
    %159 = arith.subf %153, %158 : vector<16x32xf32>
    %160 = arith.mulf %159, %159 : vector<16x32xf32>
    %cst_45 = arith.constant dense<0.000000e+00> : vector<16xf32>
    %161 = vector.multi_reduction <add>, %160, %cst_45 [1] : vector<16x32xf32> to vector<16xf32>
    %162 = vector.shape_cast %161 : vector<16xf32> to vector<16x1xf32>
    %cst_46 = arith.constant 3.200000e+01 : f32
    %163 = vector.broadcast %cst_46 : f32 to vector<16x1xf32>
    %164 = arith.divf %162, %163 : vector<16x1xf32>
    %165 = vector.broadcast %157 : vector<16x1xf32> to vector<16x32xf32>
    %166 = arith.subf %153, %165 : vector<16x32xf32>
    %cst_47 = arith.constant 9.99999996E-13 : f32
    %167 = vector.broadcast %cst_47 : f32 to vector<16x1xf32>
    %168 = arith.addf %164, %167 : vector<16x1xf32>
    %169 = math.rsqrt %168 : vector<16x1xf32>
    %170 = vector.broadcast %169 : vector<16x1xf32> to vector<16x32xf32>
    %171 = arith.mulf %166, %170 : vector<16x32xf32>
    %172 = vector.broadcast %22 : vector<1x32xf32> to vector<16x32xf32>
    %173 = arith.mulf %171, %172 : vector<16x32xf32>
    %174 = vector.broadcast %23 : vector<1x32xf32> to vector<16x32xf32>
    %175 = arith.addf %173, %174 : vector<16x32xf32>
    %c1 = arith.constant 1 : index
    %c0_48 = arith.constant 0 : index
    %c0_49 = arith.constant 0 : index
    %176 = vector.load %arg2[%c1, %c0_48, %c0_49] : memref<2x40x384xf32, #tpu.memory_space<vmem>>, vector<1x32x96xf32>
    %177 = vector.shape_cast %176 : vector<1x32x96xf32> to vector<32x96xf32>
    %c1_50 = arith.constant 1 : index
    %c0_51 = arith.constant 0 : index
    %c96_52 = arith.constant 96 : index
    %178 = vector.load %arg2[%c1_50, %c0_51, %c96_52] : memref<2x40x384xf32, #tpu.memory_space<vmem>>, vector<1x32x32xf32>
    %179 = vector.shape_cast %178 : vector<1x32x32xf32> to vector<32x32xf32>
    %c1_53 = arith.constant 1 : index
    %c0_54 = arith.constant 0 : index
    %c128_55 = arith.constant 128 : index
    %180 = vector.load %arg2[%c1_53, %c0_54, %c128_55] : memref<2x40x384xf32, #tpu.memory_space<vmem>>, vector<1x32x128xf32>
    %181 = vector.shape_cast %180 : vector<1x32x128xf32> to vector<32x128xf32>
    %c1_56 = arith.constant 1 : index
    %c0_57 = arith.constant 0 : index
    %c256_58 = arith.constant 256 : index
    %182 = vector.load %arg2[%c1_56, %c0_57, %c256_58] : memref<2x40x384xf32, #tpu.memory_space<vmem>>, vector<1x32x128xf32>
    %183 = vector.shape_cast %182 : vector<1x32x128xf32> to vector<32x128xf32>
    %c1_59 = arith.constant 1 : index
    %c32_60 = arith.constant 32 : index
    %c0_61 = arith.constant 0 : index
    %184 = vector.load %arg2[%c1_59, %c32_60, %c0_61] : memref<2x40x384xf32, #tpu.memory_space<vmem>>, vector<1x8x128xf32>
    %185 = vector.shape_cast %184 : vector<1x8x128xf32> to vector<8x128xf32>
    %186 = vector.extract_strided_slice %185 {offsets = [0, 0], sizes = [1, 96], strides = [1, 1]} : vector<8x128xf32> to vector<1x96xf32>
    %187 = vector.extract_strided_slice %185 {offsets = [1, 0], sizes = [1, 128], strides = [1, 1]} : vector<8x128xf32> to vector<1x128xf32>
    %188 = vector.extract_strided_slice %185 {offsets = [2, 0], sizes = [1, 32], strides = [1, 1]} : vector<8x128xf32> to vector<1x32xf32>
    %189 = vector.extract_strided_slice %185 {offsets = [3, 0], sizes = [1, 32], strides = [1, 1]} : vector<8x128xf32> to vector<1x32xf32>
    %190 = vector.extract_strided_slice %185 {offsets = [4, 0], sizes = [1, 32], strides = [1, 1]} : vector<8x128xf32> to vector<1x32xf32>
    %191 = vector.extract_strided_slice %185 {offsets = [5, 0], sizes = [1, 32], strides = [1, 1]} : vector<8x128xf32> to vector<1x32xf32>
    %192 = vector.extract_strided_slice %185 {offsets = [6, 0], sizes = [1, 32], strides = [1, 1]} : vector<8x128xf32> to vector<1x32xf32>
    %193 = vector.extract_strided_slice %185 {offsets = [7, 0], sizes = [1, 32], strides = [1, 1]} : vector<8x128xf32> to vector<1x32xf32>
    %cst_62 = arith.constant dense<0.000000e+00> : vector<16x96xf32>
    %194 = tpu.matmul %175, %177, %cst_62 {dimension_numbers = #tpu.dot_dimension_numbers<[1], [0], [0], [1], [0, 0, 1, 1], [], []>} : vector<16x32xf32>, vector<32x96xf32>, vector<16x96xf32> -> vector<16x96xf32>
    %195 = vector.broadcast %186 : vector<1x96xf32> to vector<16x96xf32>
    %196 = arith.addf %194, %195 : vector<16x96xf32>
    %197 = vector.extract_strided_slice %196 {offsets = [0, 0], sizes = [16, 8], strides = [1, 1]} : vector<16x96xf32> to vector<16x8xf32>
    %198 = vector.shape_cast %197 : vector<16x8xf32> to vector<2x8x8xf32>
    %199 = vector.extract_strided_slice %196 {offsets = [0, 32], sizes = [16, 8], strides = [1, 1]} : vector<16x96xf32> to vector<16x8xf32>
    %200 = vector.shape_cast %199 : vector<16x8xf32> to vector<2x8x8xf32>
    %201 = vector.extract_strided_slice %196 {offsets = [0, 64], sizes = [16, 8], strides = [1, 1]} : vector<16x96xf32> to vector<16x8xf32>
    %202 = vector.shape_cast %201 : vector<16x8xf32> to vector<2x8x8xf32>
    "tpu.trace_start"() <{level = 10 : i32, message = "bld,brd->blr"}> : () -> ()
    %cst_63 = arith.constant dense<0.000000e+00> : vector<2x8x8xf32>
    %203 = tpu.matmul %198, %200, %cst_63 {dimension_numbers = #tpu.dot_dimension_numbers<[2], [2], [1], [1], [0, 0, 0, 1, 1, 1], [0], [0]>} : vector<2x8x8xf32>, vector<2x8x8xf32>, vector<2x8x8xf32> -> vector<2x8x8xf32>
    "tpu.trace_stop"() : () -> ()
    %204 = arith.addf %203, %5 : vector<2x8x8xf32>
    %cst_64 = arith.constant dense<0xFF800000> : vector<2x8xf32>
    %205 = vector.multi_reduction <maximumf>, %204, %cst_64 [2] : vector<2x8x8xf32> to vector<2x8xf32>
    %206 = vector.shape_cast %205 : vector<2x8xf32> to vector<2x8x1xf32>
    %207 = vector.broadcast %206 : vector<2x8x1xf32> to vector<2x8x8xf32>
    %208 = arith.subf %204, %207 : vector<2x8x8xf32>
    %209 = math.exp %208 : vector<2x8x8xf32>
    %cst_65 = arith.constant dense<0.000000e+00> : vector<2x8xf32>
    %210 = vector.multi_reduction <add>, %209, %cst_65 [2] : vector<2x8x8xf32> to vector<2x8xf32>
    %211 = vector.shape_cast %210 : vector<2x8xf32> to vector<2x8x1xf32>
    %212 = tpu.reciprocal %211 {approx = true} : vector<2x8x1xf32> -> vector<2x8x1xf32>
    %213 = vector.broadcast %212 : vector<2x8x1xf32> to vector<2x8x8xf32>
    %214 = arith.mulf %209, %213 : vector<2x8x8xf32>
    "tpu.trace_start"() <{level = 10 : i32, message = "blr,brd->bld"}> : () -> ()
    %cst_66 = arith.constant dense<0.000000e+00> : vector<2x8x8xf32>
    %215 = tpu.matmul %214, %202, %cst_66 {dimension_numbers = #tpu.dot_dimension_numbers<[2], [1], [1], [2], [0, 0, 0, 1, 1, 2], [0], [0]>} : vector<2x8x8xf32>, vector<2x8x8xf32>, vector<2x8x8xf32> -> vector<2x8x8xf32>
    "tpu.trace_stop"() : () -> ()
    %216 = vector.shape_cast %215 : vector<2x8x8xf32> to vector<16x8xf32>
    %217 = vector.extract_strided_slice %196 {offsets = [0, 8], sizes = [16, 8], strides = [1, 1]} : vector<16x96xf32> to vector<16x8xf32>
    %218 = vector.shape_cast %217 : vector<16x8xf32> to vector<2x8x8xf32>
    %219 = vector.extract_strided_slice %196 {offsets = [0, 40], sizes = [16, 8], strides = [1, 1]} : vector<16x96xf32> to vector<16x8xf32>
    %220 = vector.shape_cast %219 : vector<16x8xf32> to vector<2x8x8xf32>
    %221 = vector.extract_strided_slice %196 {offsets = [0, 72], sizes = [16, 8], strides = [1, 1]} : vector<16x96xf32> to vector<16x8xf32>
    %222 = vector.shape_cast %221 : vector<16x8xf32> to vector<2x8x8xf32>
    "tpu.trace_start"() <{level = 10 : i32, message = "bld,brd->blr"}> : () -> ()
    %cst_67 = arith.constant dense<0.000000e+00> : vector<2x8x8xf32>
    %223 = tpu.matmul %218, %220, %cst_67 {dimension_numbers = #tpu.dot_dimension_numbers<[2], [2], [1], [1], [0, 0, 0, 1, 1, 1], [0], [0]>} : vector<2x8x8xf32>, vector<2x8x8xf32>, vector<2x8x8xf32> -> vector<2x8x8xf32>
    "tpu.trace_stop"() : () -> ()
    %224 = arith.addf %223, %5 : vector<2x8x8xf32>
    %cst_68 = arith.constant dense<0xFF800000> : vector<2x8xf32>
    %225 = vector.multi_reduction <maximumf>, %224, %cst_68 [2] : vector<2x8x8xf32> to vector<2x8xf32>
    %226 = vector.shape_cast %225 : vector<2x8xf32> to vector<2x8x1xf32>
    %227 = vector.broadcast %226 : vector<2x8x1xf32> to vector<2x8x8xf32>
    %228 = arith.subf %224, %227 : vector<2x8x8xf32>
    %229 = math.exp %228 : vector<2x8x8xf32>
    %cst_69 = arith.constant dense<0.000000e+00> : vector<2x8xf32>
    %230 = vector.multi_reduction <add>, %229, %cst_69 [2] : vector<2x8x8xf32> to vector<2x8xf32>
    %231 = vector.shape_cast %230 : vector<2x8xf32> to vector<2x8x1xf32>
    %232 = tpu.reciprocal %231 {approx = true} : vector<2x8x1xf32> -> vector<2x8x1xf32>
    %233 = vector.broadcast %232 : vector<2x8x1xf32> to vector<2x8x8xf32>
    %234 = arith.mulf %229, %233 : vector<2x8x8xf32>
    "tpu.trace_start"() <{level = 10 : i32, message = "blr,brd->bld"}> : () -> ()
    %cst_70 = arith.constant dense<0.000000e+00> : vector<2x8x8xf32>
    %235 = tpu.matmul %234, %222, %cst_70 {dimension_numbers = #tpu.dot_dimension_numbers<[2], [1], [1], [2], [0, 0, 0, 1, 1, 2], [0], [0]>} : vector<2x8x8xf32>, vector<2x8x8xf32>, vector<2x8x8xf32> -> vector<2x8x8xf32>
    "tpu.trace_stop"() : () -> ()
    %236 = vector.shape_cast %235 : vector<2x8x8xf32> to vector<16x8xf32>
    %237 = vector.extract_strided_slice %196 {offsets = [0, 16], sizes = [16, 8], strides = [1, 1]} : vector<16x96xf32> to vector<16x8xf32>
    %238 = vector.shape_cast %237 : vector<16x8xf32> to vector<2x8x8xf32>
    %239 = vector.extract_strided_slice %196 {offsets = [0, 48], sizes = [16, 8], strides = [1, 1]} : vector<16x96xf32> to vector<16x8xf32>
    %240 = vector.shape_cast %239 : vector<16x8xf32> to vector<2x8x8xf32>
    %241 = vector.extract_strided_slice %196 {offsets = [0, 80], sizes = [16, 8], strides = [1, 1]} : vector<16x96xf32> to vector<16x8xf32>
    %242 = vector.shape_cast %241 : vector<16x8xf32> to vector<2x8x8xf32>
    "tpu.trace_start"() <{level = 10 : i32, message = "bld,brd->blr"}> : () -> ()
    %cst_71 = arith.constant dense<0.000000e+00> : vector<2x8x8xf32>
    %243 = tpu.matmul %238, %240, %cst_71 {dimension_numbers = #tpu.dot_dimension_numbers<[2], [2], [1], [1], [0, 0, 0, 1, 1, 1], [0], [0]>} : vector<2x8x8xf32>, vector<2x8x8xf32>, vector<2x8x8xf32> -> vector<2x8x8xf32>
    "tpu.trace_stop"() : () -> ()
    %244 = arith.addf %243, %5 : vector<2x8x8xf32>
    %cst_72 = arith.constant dense<0xFF800000> : vector<2x8xf32>
    %245 = vector.multi_reduction <maximumf>, %244, %cst_72 [2] : vector<2x8x8xf32> to vector<2x8xf32>
    %246 = vector.shape_cast %245 : vector<2x8xf32> to vector<2x8x1xf32>
    %247 = vector.broadcast %246 : vector<2x8x1xf32> to vector<2x8x8xf32>
    %248 = arith.subf %244, %247 : vector<2x8x8xf32>
    %249 = math.exp %248 : vector<2x8x8xf32>
    %cst_73 = arith.constant dense<0.000000e+00> : vector<2x8xf32>
    %250 = vector.multi_reduction <add>, %249, %cst_73 [2] : vector<2x8x8xf32> to vector<2x8xf32>
    %251 = vector.shape_cast %250 : vector<2x8xf32> to vector<2x8x1xf32>
    %252 = tpu.reciprocal %251 {approx = true} : vector<2x8x1xf32> -> vector<2x8x1xf32>
    %253 = vector.broadcast %252 : vector<2x8x1xf32> to vector<2x8x8xf32>
    %254 = arith.mulf %249, %253 : vector<2x8x8xf32>
    "tpu.trace_start"() <{level = 10 : i32, message = "blr,brd->bld"}> : () -> ()
    %cst_74 = arith.constant dense<0.000000e+00> : vector<2x8x8xf32>
    %255 = tpu.matmul %254, %242, %cst_74 {dimension_numbers = #tpu.dot_dimension_numbers<[2], [1], [1], [2], [0, 0, 0, 1, 1, 2], [0], [0]>} : vector<2x8x8xf32>, vector<2x8x8xf32>, vector<2x8x8xf32> -> vector<2x8x8xf32>
    "tpu.trace_stop"() : () -> ()
    %256 = vector.shape_cast %255 : vector<2x8x8xf32> to vector<16x8xf32>
    %257 = vector.extract_strided_slice %196 {offsets = [0, 24], sizes = [16, 8], strides = [1, 1]} : vector<16x96xf32> to vector<16x8xf32>
    %258 = vector.shape_cast %257 : vector<16x8xf32> to vector<2x8x8xf32>
    %259 = vector.extract_strided_slice %196 {offsets = [0, 56], sizes = [16, 8], strides = [1, 1]} : vector<16x96xf32> to vector<16x8xf32>
    %260 = vector.shape_cast %259 : vector<16x8xf32> to vector<2x8x8xf32>
    %261 = vector.extract_strided_slice %196 {offsets = [0, 88], sizes = [16, 8], strides = [1, 1]} : vector<16x96xf32> to vector<16x8xf32>
    %262 = vector.shape_cast %261 : vector<16x8xf32> to vector<2x8x8xf32>
    "tpu.trace_start"() <{level = 10 : i32, message = "bld,brd->blr"}> : () -> ()
    %cst_75 = arith.constant dense<0.000000e+00> : vector<2x8x8xf32>
    %263 = tpu.matmul %258, %260, %cst_75 {dimension_numbers = #tpu.dot_dimension_numbers<[2], [2], [1], [1], [0, 0, 0, 1, 1, 1], [0], [0]>} : vector<2x8x8xf32>, vector<2x8x8xf32>, vector<2x8x8xf32> -> vector<2x8x8xf32>
    "tpu.trace_stop"() : () -> ()
    %264 = arith.addf %263, %5 : vector<2x8x8xf32>
    %cst_76 = arith.constant dense<0xFF800000> : vector<2x8xf32>
    %265 = vector.multi_reduction <maximumf>, %264, %cst_76 [2] : vector<2x8x8xf32> to vector<2x8xf32>
    %266 = vector.shape_cast %265 : vector<2x8xf32> to vector<2x8x1xf32>
    %267 = vector.broadcast %266 : vector<2x8x1xf32> to vector<2x8x8xf32>
    %268 = arith.subf %264, %267 : vector<2x8x8xf32>
    %269 = math.exp %268 : vector<2x8x8xf32>
    %cst_77 = arith.constant dense<0.000000e+00> : vector<2x8xf32>
    %270 = vector.multi_reduction <add>, %269, %cst_77 [2] : vector<2x8x8xf32> to vector<2x8xf32>
    %271 = vector.shape_cast %270 : vector<2x8xf32> to vector<2x8x1xf32>
    %272 = tpu.reciprocal %271 {approx = true} : vector<2x8x1xf32> -> vector<2x8x1xf32>
    %273 = vector.broadcast %272 : vector<2x8x1xf32> to vector<2x8x8xf32>
    %274 = arith.mulf %269, %273 : vector<2x8x8xf32>
    "tpu.trace_start"() <{level = 10 : i32, message = "blr,brd->bld"}> : () -> ()
    %cst_78 = arith.constant dense<0.000000e+00> : vector<2x8x8xf32>
    %275 = tpu.matmul %274, %262, %cst_78 {dimension_numbers = #tpu.dot_dimension_numbers<[2], [1], [1], [2], [0, 0, 0, 1, 1, 2], [0], [0]>} : vector<2x8x8xf32>, vector<2x8x8xf32>, vector<2x8x8xf32> -> vector<2x8x8xf32>
    "tpu.trace_stop"() : () -> ()
    %276 = vector.shape_cast %275 : vector<2x8x8xf32> to vector<16x8xf32>
    %277 = tpu.concatenate %216, %236, %256, %276 in 1 : vector<16x8xf32>, vector<16x8xf32>, vector<16x8xf32>, vector<16x8xf32> -> vector<16x32xf32>
    %cst_79 = arith.constant dense<0.000000e+00> : vector<16x32xf32>
    %278 = tpu.matmul %277, %179, %cst_79 {dimension_numbers = #tpu.dot_dimension_numbers<[1], [0], [0], [1], [0, 0, 1, 1], [], []>} : vector<16x32xf32>, vector<32x32xf32>, vector<16x32xf32> -> vector<16x32xf32>
    %279 = vector.broadcast %188 : vector<1x32xf32> to vector<16x32xf32>
    %280 = arith.addf %278, %279 : vector<16x32xf32>
    %281 = arith.addf %280, %175 : vector<16x32xf32>
    %cst_80 = arith.constant dense<0.000000e+00> : vector<16xf32>
    %282 = vector.multi_reduction <add>, %281, %cst_80 [1] : vector<16x32xf32> to vector<16xf32>
    %283 = vector.shape_cast %282 : vector<16xf32> to vector<16x1xf32>
    %cst_81 = arith.constant 3.200000e+01 : f32
    %284 = vector.broadcast %cst_81 : f32 to vector<16x1xf32>
    %285 = arith.divf %283, %284 : vector<16x1xf32>
    %286 = vector.broadcast %285 : vector<16x1xf32> to vector<16x32xf32>
    %287 = arith.subf %281, %286 : vector<16x32xf32>
    %288 = arith.mulf %287, %287 : vector<16x32xf32>
    %cst_82 = arith.constant dense<0.000000e+00> : vector<16xf32>
    %289 = vector.multi_reduction <add>, %288, %cst_82 [1] : vector<16x32xf32> to vector<16xf32>
    %290 = vector.shape_cast %289 : vector<16xf32> to vector<16x1xf32>
    %cst_83 = arith.constant 3.200000e+01 : f32
    %291 = vector.broadcast %cst_83 : f32 to vector<16x1xf32>
    %292 = arith.divf %290, %291 : vector<16x1xf32>
    %293 = vector.broadcast %285 : vector<16x1xf32> to vector<16x32xf32>
    %294 = arith.subf %281, %293 : vector<16x32xf32>
    %cst_84 = arith.constant 9.99999996E-13 : f32
    %295 = vector.broadcast %cst_84 : f32 to vector<16x1xf32>
    %296 = arith.addf %292, %295 : vector<16x1xf32>
    %297 = math.rsqrt %296 : vector<16x1xf32>
    %298 = vector.broadcast %297 : vector<16x1xf32> to vector<16x32xf32>
    %299 = arith.mulf %294, %298 : vector<16x32xf32>
    %300 = vector.broadcast %189 : vector<1x32xf32> to vector<16x32xf32>
    %301 = arith.mulf %299, %300 : vector<16x32xf32>
    %302 = vector.broadcast %190 : vector<1x32xf32> to vector<16x32xf32>
    %303 = arith.addf %301, %302 : vector<16x32xf32>
    %cst_85 = arith.constant dense<0.000000e+00> : vector<16x128xf32>
    %304 = tpu.matmul %303, %181, %cst_85 {dimension_numbers = #tpu.dot_dimension_numbers<[1], [0], [0], [1], [0, 0, 1, 1], [], []>} : vector<16x32xf32>, vector<32x128xf32>, vector<16x128xf32> -> vector<16x128xf32>
    %305 = vector.broadcast %187 : vector<1x128xf32> to vector<16x128xf32>
    %306 = arith.addf %304, %305 : vector<16x128xf32>
    %307 = arith.mulf %306, %306 : vector<16x128xf32>
    %308 = arith.mulf %306, %307 : vector<16x128xf32>
    %cst_86 = arith.constant 4.471500e-02 : f32
    %309 = vector.broadcast %cst_86 : f32 to vector<16x128xf32>
    %310 = arith.mulf %309, %308 : vector<16x128xf32>
    %311 = arith.addf %306, %310 : vector<16x128xf32>
    %cst_87 = arith.constant 0.797884583 : f32
    %312 = vector.broadcast %cst_87 : f32 to vector<16x128xf32>
    %313 = arith.mulf %312, %311 : vector<16x128xf32>
    %314 = math.tanh %313 : vector<16x128xf32>
    %cst_88 = arith.constant 1.000000e+00 : f32
    %315 = vector.broadcast %cst_88 : f32 to vector<16x128xf32>
    %316 = arith.addf %315, %314 : vector<16x128xf32>
    %cst_89 = arith.constant 5.000000e-01 : f32
    %317 = vector.broadcast %cst_89 : f32 to vector<16x128xf32>
    %318 = arith.mulf %317, %316 : vector<16x128xf32>
    %319 = arith.mulf %306, %318 : vector<16x128xf32>
    %cst_90 = arith.constant dense<0.000000e+00> : vector<16x32xf32>
    %320 = tpu.matmul %319, %183, %cst_90 {dimension_numbers = #tpu.dot_dimension_numbers<[1], [1], [0], [0], [0, 0, 1, 0], [], []>} : vector<16x128xf32>, vector<32x128xf32>, vector<16x32xf32> -> vector<16x32xf32>
    %321 = vector.broadcast %191 : vector<1x32xf32> to vector<16x32xf32>
    %322 = arith.addf %320, %321 : vector<16x32xf32>
    %323 = arith.addf %322, %303 : vector<16x32xf32>
    %cst_91 = arith.constant dense<0.000000e+00> : vector<16xf32>
    %324 = vector.multi_reduction <add>, %323, %cst_91 [1] : vector<16x32xf32> to vector<16xf32>
    %325 = vector.shape_cast %324 : vector<16xf32> to vector<16x1xf32>
    %cst_92 = arith.constant 3.200000e+01 : f32
    %326 = vector.broadcast %cst_92 : f32 to vector<16x1xf32>
    %327 = arith.divf %325, %326 : vector<16x1xf32>
    %328 = vector.broadcast %327 : vector<16x1xf32> to vector<16x32xf32>
    %329 = arith.subf %323, %328 : vector<16x32xf32>
    %330 = arith.mulf %329, %329 : vector<16x32xf32>
    %cst_93 = arith.constant dense<0.000000e+00> : vector<16xf32>
    %331 = vector.multi_reduction <add>, %330, %cst_93 [1] : vector<16x32xf32> to vector<16xf32>
    %332 = vector.shape_cast %331 : vector<16xf32> to vector<16x1xf32>
    %cst_94 = arith.constant 3.200000e+01 : f32
    %333 = vector.broadcast %cst_94 : f32 to vector<16x1xf32>
    %334 = arith.divf %332, %333 : vector<16x1xf32>
    %335 = vector.broadcast %327 : vector<16x1xf32> to vector<16x32xf32>
    %336 = arith.subf %323, %335 : vector<16x32xf32>
    %cst_95 = arith.constant 9.99999996E-13 : f32
    %337 = vector.broadcast %cst_95 : f32 to vector<16x1xf32>
    %338 = arith.addf %334, %337 : vector<16x1xf32>
    %339 = math.rsqrt %338 : vector<16x1xf32>
    %340 = vector.broadcast %339 : vector<16x1xf32> to vector<16x32xf32>
    %341 = arith.mulf %336, %340 : vector<16x32xf32>
    %342 = vector.broadcast %192 : vector<1x32xf32> to vector<16x32xf32>
    %343 = arith.mulf %341, %342 : vector<16x32xf32>
    %344 = vector.broadcast %193 : vector<1x32xf32> to vector<16x32xf32>
    %345 = arith.addf %343, %344 : vector<16x32xf32>
    %346 = vector.shape_cast %345 : vector<16x32xf32> to vector<2x8x32xf32>
    %c0_96 = arith.constant 0 : index
    %c0_97 = arith.constant 0 : index
    %c0_98 = arith.constant 0 : index
    %347 = vector.load %arg3[%c0_96, %c0_97, %c0_98] : memref<2x8x32xf32, #tpu.memory_space<vmem>>, vector<2x8x32xf32>
    tpu.vector_store %arg3[%c0_96, %c0_97, %c0_98], %346 {strides = array<i32>} : memref<2x8x32xf32, #tpu.memory_space<vmem>>, vector<2x8x32xf32>,
    return
  }
}

</mosaic_0001>

<bundles_post_ra>
// kernel: tpu_custom_call.1
= control target key start
LH: loop header
LB: loop body
LE: loop exit
PB: predicated region body
PF: predicated region fallthrough
CT: control target
= control target key end

     0   :  { %8 = vsyncpa [#allocation3], 0  ;;  %s5000_s0 = inlined_call_operand.hbm [shape: f32[2,8,32], index: 0, kind: input, shape index: {}]   ;;  %s5001_s1 = inlined_call_operand.vmem [shape: f32[2,8], index: 1, kind: input, shape index: {}]   ;;  %s5002_s2 = inlined_call_operand.hbm [shape: f32[2,40,384], index: 2, kind: input, shape index: {}]   ;;  %s5003_s3 = inlined_call_operand.hbm [shape: f32[2,8,32], index: 3, kind: output, shape index: {}]  }
   0x1   :  { %9 = vsyncpa [#allocation6], 0 }
   0x2   :  { %10 = vsyncpa [#allocation4], 0  ;;  %s4411_s12 = smov [#allocation2]   ;;  %s4339_s16 = scalar_lea.hbm %s5000_s0, 256 }
   0x3   :  { %s16_s13 = sshll.u32 %s4411_s12, 4  ;;  %p4340_p0 = scmp.ne.s32.totalorder %s5000_s0, %s4339_s16  ;;  %s17_s13 = int_to_ptr.vmem [resolvable:$true] %s16_s13 }
   0x4   :  { %p4343_p1 = scmp.lt.u32.totalorder %s4339_s16, %s5000_s0 }
   0x6   :  { %p4345_p2 = pnand %p4343_p1, %p4340_p0 }
   0x8   :  { %4348 = shalt.err (!%p4345_p2)
}
   0x9   :  { %s4349_s21 = scalar_lea.vmem %s17_s13, 256  ;;  %p4354_p4 = scmp.lt.s32.totalorder %s17_s13, %s17_s13 }
   0xa   :  { %p4350_p3 = scmp.ne.s32.totalorder %s17_s13, %s4349_s21  ;;  %p4355_p5 = scmp.lt.s32.totalorder %s4349_s21, %s4349_s21 }
   0xc   :  { %p4356_p6 = por %p4355_p5, %p4354_p4 }
   0xe   :  { %p4357_p7 = pnand %p4356_p6, %p4350_p3 }
  0x10   :  { %4360 = shalt.err (!%p4357_p7)
}
  0x11   :  { %s4412_s22 = smov 128   ;;  %s4413_s23 = smov 8  }
  0x12   :  { %22 = dma.hbm_to_vmem [thread:$0]  %s5000_s0, 256, %s17_s13, [#allocation3], %s4412_s22, %s4412_s22, %s4413_s23  }
  0x13   :  { %s4414_s26 = smov [#allocation5]   ;;  %s4361_s30 = scalar_lea.hbm %s5002_s2, 3840 }
  0x14   :  { %s30_s27 = sshll.u32 %s4414_s26, 4  ;;  %p4362_p8 = scmp.ne.s32.totalorder %s5002_s2, %s4361_s30  ;;  %s31_s27 = int_to_ptr.vmem [resolvable:$true] %s30_s27 }
  0x15   :  { %p4365_p9 = scmp.lt.u32.totalorder %s4361_s30, %s5002_s2 }
  0x17   :  { %p4367_p10 = pnand %p4365_p9, %p4362_p8 }
  0x19   :  { %4370 = shalt.err (!%p4367_p10)
}
  0x1a   :  { %s4371_s8 = scalar_lea.vmem %s31_s27, 3840  ;;  %p4376_p12 = scmp.lt.s32.totalorder %s31_s27, %s31_s27 }
  0x1b   :  { %p4372_p11 = scmp.ne.s32.totalorder %s31_s27, %s4371_s8  ;;  %p4377_p13 = scmp.lt.s32.totalorder %s4371_s8, %s4371_s8 }
  0x1d   :  { %p4378_p0 = por %p4377_p13, %p4376_p12 }
  0x1f   :  { %p4379_p1 = pnand %p4378_p0, %p4372_p11 }
  0x21   :  { %4382 = shalt.err (!%p4379_p1)
}
  0x22   :  { %s4415_s0 = smov 384   ;;  %s4416_s9 = smov 24  }
  0x23   :  { %36 = dma.hbm_to_vmem [thread:$0]  %s5002_s2, 3840, %s31_s27, [#allocation6], %s4415_s0, %s4415_s0, %s4416_s9  }
  0x24   :  { %4405 = dma.done.wait [#allocation3], 256  }
  0x25   :  { %4406 = vsyncadd [#allocation3], 4294967040 }
  0x26   :  { %4407 = dma.done.wait [#allocation6], 3840  }
  0x27   :  { %4408 = vsyncadd [#allocation6], 4294963456  ;;  %vm96_vm0 = vcmask 261120   ;;  %v4482_v0 = vld [vmem:[#allocation5] sm:$0xff]  ;;  %v4484_v1 = vld [vmem:[#allocation5 + $0x18] sm:$0xff]  ;;  %v4417_v9 = vmov 0.0   ;;  %v58_v10 = vlaneseq }
  0x28   :  { %v4486_v2 = vld [vmem:[#allocation5 + $0x30] sm:$0xff]  ;;  %v4231_v3 = vpack.i.bf16 %v4484_v1, %v4482_v0  ;;  %v4144_v4 = vpack.c.bf16 %v4484_v1, %v4482_v0  ;;  %v4492_v5 = vld [vmem:[#allocation5 + $0x48] sm:$0xff]  ;;  %v4500_v8 = vld [vmem:[#allocation2 + $0x8] sm:$0xff]  ;;  %3917 = vmatprep.subr.mxu0 %v4417_v9  ;;  %vm4418_vm1 = vmmov 0   ;;  %s4419_s2 = smov 96   ;;  %vm181_vm2 = vcmask 64512  }
  0x29   :  { %v4494_v6 = vld [vmem:[#allocation2] sm:$0xff]  ;;  %v4148_v7 = vpack.c.bf16 %v4492_v5, %v4486_v2  ;;  %v4506_v11 = vshrl.u32 %v58_v10, 7  ;;  %3919 = vmatprep.mubr.msk.f32.mxu0 %vm4418_vm1, %v4417_v9  ;;  %v4515_v13 = vld [vmem:[#allocation5 + $0x60] sm:$0xff]  ;;  %v4420_v21 = vmov 1966171168   ;;  %s4422_s14 = smov 88  }
  0x2a   :  { %3904 = vmatprep.mubr.msk.f32.mxu1 %vm96_vm0, %v4494_v6  ;;  %4145 = vmatprep.subr.bf16.mxu1 %v4144_v4  ;;  %v56_v22 = vunpack.c.l.s4 %v4420_v21  ;;  %v3723_v25 = vld.sshfl [vmem:[%s5001_s1] sm:$0x11 pattern:$0x75316420]  ;;  %s4421_s1 = smov 64   ;;  %s4423_s15 = smov 120  }
  0x2b   :  { %4147 = vmatpush3.bf16.msra.mxu1 %v4144_v4  ;;  %v4513_v12 = vsub.s32 0, %v4506_v11  ;;  %v54_v26 = vcombine.high %v3723_v25, %v3723_v25  ;;  %s4424_s16 = smov 56   ;;  %s4425_s17 = smov 80   ;;  %vm1526_vm3 = vcmask 195584   ;;  %vm1523_vm4 = vcmask 130048  }
  0x2c   :  { %4149 = vmatprep.subr.bf16.mxu1 %v4148_v7  ;;  %v57_v23 = vunpack.c.0.s8 %v56_v22  ;;  %s4426_s18 = smov 112   ;;  %s4427_s19 = smov 48  }
  0x2d   :  { %v95_v14 = vrot.slane %v4515_v13, %v4513_v12  ;;  %s4428_s20 = smov 72   ;;  %s4429_s21 = smov 104  }
  0x2e   :  { %v60_v24 = vsub.s32 %v57_v23, %v4506_v11  ;;  %s4430_s24 = smov 40   ;;  %s4431_s25 = smov 32  }
  0x2f   :  { %4151 = vmatpush3.bf16.msra.mxu1 %v4148_v7  ;;  %s4432_s26 = smov 16   ;;  %s4433_s27 = smov [#allocation7]  }
  0x30   :  { %3907 = vmatprep.subr.mxu1 %v4417_v9  ;;  %v61_v27 = vrot.slane %v3723_v25, %v60_v24  ;;  %v68_v28 = vrot.slane %v54_v26, %v60_v24  ;;  %s3710_s28 = sshll.u32 %s4433_s27, 4  ;;  %s3711_s28 = int_to_ptr.vmem [resolvable:$true] %s3710_s28 }
  0x31   :  { %s4383_s29 = scalar_lea.vmem %s3711_s28, 256  ;;  %p4388_p3 = scmp.lt.s32.totalorder %s3711_s28, %s3711_s28 }
  0x32   :  { %3905 = vmatmul.mubr.msk.f32.vlgmr.msra.gmra.mrb[0].mxu1 %vm96_vm0, %v4500_v8  ;;  %v4544_v29 = vrot.slane %v61_v27, %v4513_v12  ;;  %v4547_v31 = vrot.slane %v68_v28, %v4513_v12  ;;  %p4384_p2 = scmp.ne.s32.totalorder %s3711_s28, %s4383_s29  ;;  %p4389_p4 = scmp.lt.s32.totalorder %s4383_s29, %s4383_s29 }
  0x33   :  { %3909 = vmatprep.mubr.msk.f32.mxu1 %vm4418_vm1, %v4417_v9 }
  0x34   :  { %p4390_p5 = por %p4389_p4, %p4388_p3 }
  0x36   :  { %p4391_p6 = pnand %p4390_p5, %p4384_p2 }
 0x105   :  { %v3906_v15 = vpop.f32.mrb[0].mxu1 }
 0x106   :  { %v169_v16 = vpop.f32.mrb[1].mxu1  ;;  %v4523_v18 = vadd.f32 %v3906_v15, %v95_v14 }
 0x107   :  { %v4519_v17 = vadd.f32 %v169_v16, %v95_v14 }
 0x109   :  { %179 = vrot.lane.b32.xlu0 %v4519_v17, %s4419_s2 }
 0x10d   :  { %257 = vrot.lane.b32.xlu0 %v4523_v18, %s4419_s2 }
 0x17b   :  { %v180_v19 = vpop.permute.xlu0 %179 }
 0x17c   :  { %3908 = vmatpush3.xpose.msk.msra.mxu1 %vm181_vm2, %v180_v19 }
 0x17d   :  { %3912 = vmatprep.subr.mxu1 %v4417_v9 }
 0x17f   :  { %3910 = vmatmul.mubr.msk.f32.vlgmr.msra.gmra.mrb[2].mxu1 %vm181_vm2, %v4519_v17  ;;  %v258_v20 = vpop.permute.xlu0 %257 }
 0x180   :  { %3913 = vmatpush3.xpose.msk.msra.mxu1 %vm181_vm2, %v258_v20  ;;  %3914 = vmatprep.mubr.msk.f32.mxu1 %vm4418_vm1, %v4417_v9 }
 0x181   :  { %3922 = vmatprep.subr.mxu1 %v4417_v9 }
 0x183   :  { %3915 = vmatmul.mubr.msk.f32.vlgmr.msra.gmra.mrb[4].mxu1 %vm181_vm2, %v4523_v18 }
 0x184   :  { %3924 = vmatprep.mubr.msk.f32.mxu1 %vm4418_vm1, %v4417_v9 }
 0x252   :  { %v252_v30 = vpop.f32.mrb[2].mxu1 }
 0x253   :  { %v253_v32 = vadd.f32 %v252_v30, %v4544_v29  ;;  %v3911_v33 = vpop.f32.mrb[3].mxu1 }
 0x255   :  { %v333_v34 = vsel %vm181_vm2, %v253_v32, -inf }
 0x256   :  { %334 = vmax.xlane.f32.xlu1 %v333_v34  ;;  %v329_v35 = vpop.f32.mrb[4].mxu1 }
 0x257   :  { %v330_v36 = vadd.f32 %v329_v35, %v4547_v31  ;;  %v3916_v37 = vpop.f32.mrb[5].mxu1 }
 0x259   :  { %v336_v38 = vsel %vm181_vm2, %v330_v36, -inf }
 0x25a   :  { %337 = vmax.xlane.f32.xlu1 %v336_v38 }
 0x26b   :  { %355 = vrot.lane.b32.xlu1 %v4519_v17, %s4421_s1 }
 0x26f   :  { %431 = vrot.lane.b32.xlu1 %v4523_v18, %s4421_s1 }
 0x273   :  { %509 = vrot.lane.b32.xlu1 %v4519_v17, %s4422_s14 }
 0x277   :  { %587 = vrot.lane.b32.xlu1 %v4523_v18, %s4422_s14 }
 0x2e3   :  { %v335_v39 = vpop.xlane.xlu1 %334 }
 0x2e4   :  { %v339_v40 = vsub.f32 %v253_v32, %v335_v39 }
 0x2e6   :  { %v341_v41 = vmul.f32 1.442695, %v339_v40 }
 0x2e7   :  { %v338_v42 = vpop.xlane.xlu1 %337 }
 0x2e8   :  { %4251 = vpow2.f32 %v341_v41  ;;  %v340_v43 = vsub.f32 %v330_v36, %v338_v42 }
 0x2ea   :  { %v343_v44 = vmul.f32 1.442695, %v340_v43 }
 0x2eb   :  { %v356_v45 = vpop.permute.xlu1 %355 }
 0x2ec   :  { %4253 = vpow2.f32 %v343_v44  ;;  %3918 = vmatpush3.msra.mxu0 %v356_v45 }
 0x2ed   :  { %3927 = vmatprep.subr.mxu0 %v4417_v9 }
 0x2ef   :  { %v432_v46 = vpop.permute.xlu1 %431 }
 0x2f0   :  { %3923 = vmatpush3.msra.mxu1 %v432_v46 }
 0x2f1   :  { %3932 = vmatprep.subr.mxu1 %v4417_v9 }
 0x2f2   :  { %v4252_v47 = vpop.eup %4251 }
 0x2f3   :  { %v345_v48 = vsel %vm181_vm2, %v4252_v47, 0.0  ;;  %v510_v51 = vpop.permute.xlu1 %509 }
 0x2f4   :  { %346 = vadd.xlane.f32.xlu0 %v345_v48 }
 0x2f6   :  { %v4254_v49 = vpop.eup %4253 }
 0x2f7   :  { %v348_v50 = vsel %vm181_vm2, %v4254_v49, 0.0  ;;  %v588_v52 = vpop.permute.xlu1 %587 }
 0x2f8   :  { %349 = vadd.xlane.f32.xlu1 %v348_v50 }
 0x309   :  { %585 = vrot.lane.b32.xlu1 %v4523_v18, %s4423_s15 }
 0x30a   :  { %507 = vrot.lane.b32.xlu0 %v4519_v17, %s4423_s15 }
 0x381   :  { %v347_v53 = vpop.xlane.xlu0 %346 }
 0x382   :  { %4255 = vrcp.f32 %v347_v53 }
 0x385   :  { %v350_v54 = vpop.xlane.xlu1 %349  ;;  %v508_v59 = vpop.permute.xlu0 %507 }
 0x386   :  { %4257 = vrcp.f32 %v350_v54 }
 0x389   :  { %v586_v60 = vpop.permute.xlu1 %585 }
 0x38c   :  { %v4256_v55 = vpop.eup %4255 }
 0x38d   :  { %v353_v56 = vmul.f32 %v4256_v55, %v4252_v47 }
 0x38f   :  { %3920 = vmatmul.mubr.msk.f32.vlgmr.msra.gmra.mrb[0].mxu0 %vm181_vm2, %v353_v56 }
 0x390   :  { %v4258_v57 = vpop.eup %4257  ;;  %3928 = vmatpush3.xpose.msk.msra.mxu0 %vm181_vm2, %v510_v51  ;;  %3929 = vmatprep.mubr.msk.f32.mxu0 %vm4418_vm1, %v4417_v9 }
 0x391   :  { %v354_v58 = vmul.f32 %v4258_v57, %v4254_v49  ;;  %3937 = vmatprep.subr.mxu0 %v4417_v9 }
 0x393   :  { %3925 = vmatmul.mubr.msk.f32.vlgmr.msra.gmra.mrb[6].mxu1 %vm181_vm2, %v354_v58  ;;  %3930 = vmatmul.mubr.msk.f32.vlgmr.msra.gmra.mrb[2].mxu0 %vm181_vm2, %v508_v59 }
 0x394   :  { %3933 = vmatpush3.xpose.msk.msra.mxu1 %vm181_vm2, %v588_v52  ;;  %3934 = vmatprep.mubr.msk.f32.mxu1 %vm4418_vm1, %v4417_v9 }
 0x395   :  { %3942 = vmatprep.subr.mxu1 %v4417_v9  ;;  %3939 = vmatprep.mubr.msk.f32.mxu0 %vm4418_vm1, %v4417_v9 }
 0x397   :  { %3935 = vmatmul.mubr.msk.f32.vlgmr.msra.gmra.mrb[8].mxu1 %vm181_vm2, %v586_v60 }
 0x398   :  { %3944 = vmatprep.mubr.msk.f32.mxu1 %vm4418_vm1, %v4417_v9 }
 0x462   :  { %v4585_v61 = vpop.f32.mrb[0].mxu0 }
 0x463   :  { %v3921_v62 = vpop.f32.mrb[1].mxu0 }
 0x466   :  { %v4587_v63 = vpop.f32.mrb[6].mxu1  ;;  %v581_v4 = vpop.f32.mrb[2].mxu0 }
 0x467   :  { %v582_v7 = vadd.f32 %v581_v4, %v4544_v29  ;;  %v3926_v10 = vpop.f32.mrb[7].mxu1  ;;  %v3931_v14 = vpop.f32.mrb[3].mxu0 }
 0x469   :  { %v663_v15 = vsel %vm181_vm2, %v582_v7, -inf }
 0x46a   :  { %v659_v16 = vpop.f32.mrb[8].mxu1  ;;  %664 = vmax.xlane.f32.xlu1 %v663_v15 }
 0x46b   :  { %v660_v19 = vadd.f32 %v659_v16, %v4547_v31  ;;  %v3936_v20 = vpop.f32.mrb[9].mxu1 }
 0x46d   :  { %v666_v21 = vsel %vm181_vm2, %v660_v19, -inf }
 0x46e   :  { %667 = vmax.xlane.f32.xlu0 %v666_v21 }
 0x47b   :  { %685 = vrot.lane.b32.xlu1 %v4519_v17, %s4424_s16 }
 0x47f   :  { %839 = vrot.lane.b32.xlu1 %v4519_v17, %s4425_s17 }
 0x483   :  { %917 = vrot.lane.b32.xlu1 %v4523_v18, %s4425_s17 }
 0x484   :  { %761 = vrot.lane.b32.xlu0 %v4523_v18, %s4424_s16 }
 0x488   :  { %837 = vrot.lane.b32.xlu0 %v4519_v17, %s4426_s18 }
 0x4f7   :  { %v665_v22 = vpop.xlane.xlu1 %664 }
 0x4f8   :  { %v669_v23 = vsub.f32 %v582_v7, %v665_v22 }
 0x4fa   :  { %v671_v24 = vmul.f32 1.442695, %v669_v23 }
 0x4fb   :  { %v686_v25 = vpop.permute.xlu1 %685  ;;  %v668_v26 = vpop.xlane.xlu0 %667 }
 0x4fc   :  { %4259 = vpow2.f32 %v671_v24  ;;  %v670_v27 = vsub.f32 %v660_v19, %v668_v26  ;;  %3938 = vmatpush3.msra.mxu0 %v686_v25 }
 0x4fd   :  { %3947 = vmatprep.subr.mxu0 %v4417_v9 }
 0x4fe   :  { %v673_v28 = vmul.f32 1.442695, %v670_v27 }
 0x4ff   :  { %v762_v30 = vpop.permute.xlu0 %761  ;;  %v840_v36 = vpop.permute.xlu1 %839 }
 0x500   :  { %4261 = vpow2.f32 %v673_v28  ;;  %3943 = vmatpush3.msra.mxu1 %v762_v30 }
 0x501   :  { %3952 = vmatprep.subr.mxu1 %v4417_v9 }
 0x503   :  { %v918_v37 = vpop.permute.xlu1 %917  ;;  %v838_v44 = vpop.permute.xlu0 %837 }
 0x506   :  { %v4260_v32 = vpop.eup %4259 }
 0x507   :  { %v675_v33 = vsel %vm181_vm2, %v4260_v32, 0.0 }
 0x508   :  { %676 = vadd.xlane.f32.xlu1 %v675_v33 }
 0x50a   :  { %v4262_v34 = vpop.eup %4261 }
 0x50b   :  { %v678_v35 = vsel %vm181_vm2, %v4262_v34, 0.0 }
 0x50c   :  { %679 = vadd.xlane.f32.xlu1 %v678_v35 }
 0x51d   :  { %915 = vrot.lane.b32.xlu1 %v4523_v18, %s4426_s18 }
 0x595   :  { %v677_v38 = vpop.xlane.xlu1 %676 }
 0x596   :  { %4263 = vrcp.f32 %v677_v38 }
 0x599   :  { %v680_v39 = vpop.xlane.xlu1 %679 }
 0x59a   :  { %4265 = vrcp.f32 %v680_v39 }
 0x59d   :  { %v916_v45 = vpop.permute.xlu1 %915 }
 0x5a0   :  { %v4264_v40 = vpop.eup %4263 }
 0x5a1   :  { %v683_v41 = vmul.f32 %v4264_v40, %v4260_v32 }
 0x5a3   :  { %3940 = vmatmul.mubr.msk.f32.vlgmr.msra.gmra.mrb[4].mxu0 %vm181_vm2, %v683_v41 }
 0x5a4   :  { %v4266_v42 = vpop.eup %4265  ;;  %3948 = vmatpush3.xpose.msk.msra.mxu0 %vm181_vm2, %v840_v36  ;;  %3949 = vmatprep.mubr.msk.f32.mxu0 %vm4418_vm1, %v4417_v9 }
 0x5a5   :  { %v684_v43 = vmul.f32 %v4266_v42, %v4262_v34  ;;  %3957 = vmatprep.subr.mxu0 %v4417_v9 }
 0x5a7   :  { %3945 = vmatmul.mubr.msk.f32.vlgmr.msra.gmra.mrb[10].mxu1 %vm181_vm2, %v684_v43  ;;  %3950 = vmatmul.mubr.msk.f32.vlgmr.msra.gmra.mrb[6].mxu0 %vm181_vm2, %v838_v44 }
 0x5a8   :  { %3953 = vmatpush3.xpose.msk.msra.mxu1 %vm181_vm2, %v918_v37  ;;  %3954 = vmatprep.mubr.msk.f32.mxu1 %vm4418_vm1, %v4417_v9 }
 0x5a9   :  { %3962 = vmatprep.subr.mxu1 %v4417_v9  ;;  %3959 = vmatprep.mubr.msk.f32.mxu0 %vm4418_vm1, %v4417_v9 }
 0x5ab   :  { %3955 = vmatmul.mubr.msk.f32.vlgmr.msra.gmra.mrb[12].mxu1 %vm181_vm2, %v916_v45  ;;  %v4236_v45 = vpack.i.bf16 %v4492_v5, %v4486_v2 }
 0x5ac   :  { %3964 = vmatprep.mubr.msk.f32.mxu1 %vm4418_vm1, %v4417_v9 }
 0x676   :  { %v4625_v46 = vpop.f32.mrb[4].mxu0 }
 0x677   :  { %v3941_v47 = vpop.f32.mrb[5].mxu0 }
 0x67a   :  { %v4627_v48 = vpop.f32.mrb[10].mxu1  ;;  %v911_v49 = vpop.f32.mrb[6].mxu0 }
 0x67b   :  { %v912_v50 = vadd.f32 %v911_v49, %v4544_v29  ;;  %v3946_v51 = vpop.f32.mrb[11].mxu1  ;;  %v3951_v52 = vpop.f32.mrb[7].mxu0 }
 0x67d   :  { %v993_v53 = vsel %vm181_vm2, %v912_v50, -inf }
 0x67e   :  { %v989_v54 = vpop.f32.mrb[12].mxu1  ;;  %994 = vmax.xlane.f32.xlu0 %v993_v53 }
 0x67f   :  { %v990_v55 = vadd.f32 %v989_v54, %v4547_v31  ;;  %v3956_v56 = vpop.f32.mrb[13].mxu1 }
 0x681   :  { %v996_v57 = vsel %vm181_vm2, %v990_v55, -inf }
 0x682   :  { %997 = vmax.xlane.f32.xlu1 %v996_v57 }
 0x693   :  { %1015 = vrot.lane.b32.xlu1 %v4519_v17, %s4427_s19 }
 0x694   :  { %1091 = vrot.lane.b32.xlu0 %v4523_v18, %s4427_s19 }
 0x697   :  { %1169 = vrot.lane.b32.xlu1 %v4519_v17, %s4428_s20 }
 0x69b   :  { %1247 = vrot.lane.b32.xlu1 %v4523_v18, %s4428_s20 }
 0x69f   :  { %1245 = vrot.lane.b32.xlu1 %v4523_v18, %s4429_s21 }
 0x70b   :  { %v995_v58 = vpop.xlane.xlu0 %994 }
 0x70c   :  { %v999_v59 = vsub.f32 %v912_v50, %v995_v58 }
 0x70e   :  { %v1001_v60 = vmul.f32 1.442695, %v999_v59 }
 0x70f   :  { %v998_v62 = vpop.xlane.xlu1 %997  ;;  %v1092_v4 = vpop.permute.xlu0 %1091 }
 0x710   :  { %4267 = vpow2.f32 %v1001_v60  ;;  %v1000_v7 = vsub.f32 %v990_v55, %v998_v62  ;;  %3963 = vmatpush3.msra.mxu1 %v1092_v4 }
 0x711   :  { %3972 = vmatprep.subr.mxu1 %v4417_v9 }
 0x712   :  { %v1003_v10 = vmul.f32 1.442695, %v1000_v7 }
 0x713   :  { %v1016_v14 = vpop.permute.xlu1 %1015 }
 0x714   :  { %4269 = vpow2.f32 %v1003_v10  ;;  %3958 = vmatpush3.msra.mxu0 %v1016_v14 }
 0x715   :  { %3967 = vmatprep.subr.mxu0 %v4417_v9 }
 0x717   :  { %v1170_v23 = vpop.permute.xlu1 %1169 }
 0x71a   :  { %v4268_v15 = vpop.eup %4267 }
 0x71b   :  { %v1005_v16 = vsel %vm181_vm2, %v4268_v15, 0.0  ;;  %v1248_v27 = vpop.permute.xlu1 %1247 }
 0x71c   :  { %1006 = vadd.xlane.f32.xlu0 %v1005_v16 }
 0x71e   :  { %v4270_v19 = vpop.eup %4269 }
 0x71f   :  { %v1008_v20 = vsel %vm181_vm2, %v4270_v19, 0.0  ;;  %v1246_v32 = vpop.permute.xlu1 %1245 }
 0x720   :  { %1009 = vadd.xlane.f32.xlu0 %v1008_v20 }
 0x736   :  { %1167 = vrot.lane.b32.xlu0 %v4519_v17, %s4429_s21 }
 0x7a9   :  { %v1007_v21 = vpop.xlane.xlu0 %1006 }
 0x7aa   :  { %4271 = vrcp.f32 %v1007_v21 }
 0x7ad   :  { %v1010_v22 = vpop.xlane.xlu0 %1009 }
 0x7ae   :  { %4273 = vrcp.f32 %v1010_v22 }
 0x7b1   :  { %v1168_v30 = vpop.permute.xlu0 %1167 }
 0x7b4   :  { %v4272_v24 = vpop.eup %4271 }
 0x7b5   :  { %v1013_v25 = vmul.f32 %v4272_v24, %v4268_v15 }
 0x7b7   :  { %3960 = vmatmul.mubr.msk.f32.vlgmr.msra.gmra.mrb[8].mxu0 %vm181_vm2, %v1013_v25 }
 0x7b8   :  { %v4274_v26 = vpop.eup %4273  ;;  %3968 = vmatpush3.xpose.msk.msra.mxu0 %vm181_vm2, %v1170_v23  ;;  %3969 = vmatprep.mubr.msk.f32.mxu0 %vm4418_vm1, %v4417_v9 }
 0x7b9   :  { %v1014_v28 = vmul.f32 %v4274_v26, %v4270_v19  ;;  %3977 = vmatprep.subr.mxu0 %v4417_v9 }
 0x7bb   :  { %3965 = vmatmul.mubr.msk.f32.vlgmr.msra.gmra.mrb[14].mxu1 %vm181_vm2, %v1014_v28  ;;  %3970 = vmatmul.mubr.msk.f32.vlgmr.msra.gmra.mrb[10].mxu0 %vm181_vm2, %v1168_v30 }
 0x7bc   :  { %3973 = vmatpush3.xpose.msk.msra.mxu1 %vm181_vm2, %v1248_v27  ;;  %3974 = vmatprep.mubr.msk.f32.mxu1 %vm4418_vm1, %v4417_v9 }
 0x7bd   :  { %3982 = vmatprep.subr.mxu1 %v4417_v9  ;;  %3979 = vmatprep.mubr.msk.f32.mxu0 %vm4418_vm1, %v4417_v9 }
 0x7bf   :  { %3975 = vmatmul.mubr.msk.f32.vlgmr.msra.gmra.mrb[16].mxu1 %vm181_vm2, %v1246_v32 }
 0x7c0   :  { %3984 = vmatprep.mubr.msk.f32.mxu1 %vm4418_vm1, %v4417_v9 }
 0x88a   :  { %v1087_v33 = vpop.f32.mrb[8].mxu0 }
 0x88b   :  { %v3961_v34 = vpop.f32.mrb[9].mxu0 }
 0x88e   :  { %v1163_v35 = vpop.f32.mrb[14].mxu1  ;;  %v1241_v36 = vpop.f32.mrb[10].mxu0 }
 0x88f   :  { %v1242_v37 = vadd.f32 %v1241_v36, %v4544_v29  ;;  %v3966_v38 = vpop.f32.mrb[15].mxu1  ;;  %v3971_v39 = vpop.f32.mrb[11].mxu0 }
 0x891   :  { %v1323_v40 = vsel %vm181_vm2, %v1242_v37, -inf }
 0x892   :  { %v1319_v41 = vpop.f32.mrb[16].mxu1  ;;  %1324 = vmax.xlane.f32.xlu0 %v1323_v40 }
 0x893   :  { %v1320_v42 = vadd.f32 %v1319_v41, %v4547_v31  ;;  %v3976_v43 = vpop.f32.mrb[17].mxu1 }
 0x895   :  { %v1326_v44 = vsel %vm181_vm2, %v1320_v42, -inf }
 0x896   :  { %1327 = vmax.xlane.f32.xlu1 %v1326_v44 }
 0x8a7   :  { %1345 = vrot.lane.b32.xlu1 %v4519_v17, %s4430_s24 }
 0x8ab   :  { %4232 = vrot.lane.b32.xlu1 %v4231_v3, %s4431_s25 }
 0x8af   :  { %4237 = vrot.lane.b32.xlu1 %v4236_v45, %s4431_s25 }
 0x8b3   :  { %1501 = vrot.lane.b32.xlu1 %v4627_v48, %s4413_s23 }
 0x8b7   :  { %1509 = vrot.lane.b32.xlu1 %v1163_v35, %s4432_s26 }
 0x91f   :  { %v1325_v47 = vpop.xlane.xlu0 %1324 }
 0x920   :  { %v1329_v49 = vsub.f32 %v1242_v37, %v1325_v47 }
 0x922   :  { %v1331_v17 = vmul.f32 1.442695, %v1329_v49 }
 0x923   :  { %v1328_v50 = vpop.xlane.xlu1 %1327 }
 0x924   :  { %4275 = vpow2.f32 %v1331_v17  ;;  %v1330_v51 = vsub.f32 %v1320_v42, %v1328_v50 }
 0x926   :  { %v1333_v52 = vmul.f32 1.442695, %v1330_v51 }
 0x927   :  { %v1346_v0 = vpop.permute.xlu1 %1345 }
 0x928   :  { %4277 = vpow2.f32 %v1333_v52  ;;  %3978 = vmatpush3.msra.mxu0 %v1346_v0  ;;  %v84_v52 = vld [vmem:[#allocation5 + $0x20] sm:$0xff] }
 0x92b   :  { %v4233_v1 = vpop.permute.xlu1 %4232 }
 0x92c   :  { %v4235_v2 = vunpack.i.h.bf16 %v4233_v1  ;;  %v4234_v3 = vunpack.i.l.bf16 %v4233_v1  ;;  %v85_v1 = vld [vmem:[#allocation5 + $0x38] sm:$0xff] }
 0x92e   :  { %v4276_v5 = vpop.eup %4275  ;;  %v4152_v53 = vpack.c.bf16 %v4235_v2, %v4234_v3  ;;  %v86_v2 = vld [vmem:[#allocation5 + $0x50] sm:$0xff] }
 0x92f   :  { %v1335_v48 = vsel %vm181_vm2, %v4276_v5, 0.0  ;;  %v4238_v58 = vpop.permute.xlu1 %4237  ;;  %v4164_v3 = vpack.c.bf16 %v86_v2, %v85_v1 }
 0x930   :  { %1336 = vadd.xlane.f32.xlu0 %v1335_v48  ;;  %4153 = vmatprep.subr.bf16.mxu0 %v4152_v53  ;;  %v4240_v59 = vunpack.i.h.bf16 %v4238_v58  ;;  %v4239_v60 = vunpack.i.l.bf16 %v4238_v58  ;;  %v1667_v58 = vsub.s32 4, %v4506_v11 }
 0x932   :  { %v4278_v54 = vpop.eup %4277  ;;  %v4156_v7 = vpack.c.bf16 %v4240_v59, %v4239_v60 }
 0x933   :  { %v1338_v55 = vsel %vm181_vm2, %v4278_v54, 0.0  ;;  %v1502_v21 = vpop.permute.xlu1 %1501 }
 0x934   :  { %1339 = vadd.xlane.f32.xlu0 %v1338_v55  ;;  %v1522_v28 = vsel %vm181_vm2, %v4587_v63, %v1502_v21 }
 0x937   :  { %v1510_v24 = vpop.permute.xlu1 %1509 }
 0x938   :  { %v1525_v30 = vsel %vm1523_vm4, %v1522_v28, %v1510_v24  ;;  %v1673_v24 = vsub.s32 1, %v4506_v11 }
 0x94a   :  { %1421 = vrot.lane.b32.xlu0 %v4523_v18, %s4430_s24 }
 0x94e   :  { %1499 = vrot.lane.b32.xlu0 %v4625_v46, %s4413_s23 }
 0x952   :  { %1507 = vrot.lane.b32.xlu0 %v1087_v33, %s4432_s26 }
 0x9bd   :  { %v1337_v56 = vpop.xlane.xlu0 %1336 }
 0x9be   :  { %4279 = vrcp.f32 %v1337_v56 }
 0x9c1   :  { %v1340_v57 = vpop.xlane.xlu0 %1339 }
 0x9c2   :  { %4281 = vrcp.f32 %v1340_v57  ;;  %v1661_v57 = vsub.s32 3, %v4506_v11 }
 0x9c4   :  { %v1662_v59 = vrot.slane %v4515_v13, %v1661_v57 }
 0x9c5   :  { %v1422_v62 = vpop.permute.xlu0 %1421 }
 0x9c6   :  { %3983 = vmatpush3.msra.mxu1 %v1422_v62 }
 0x9c8   :  { %v4280_v4 = vpop.eup %4279 }
 0x9c9   :  { %v1343_v10 = vmul.f32 %v4280_v4, %v4276_v5  ;;  %v1500_v20 = vpop.permute.xlu0 %1499  ;;  %v1668_v4 = vrot.slane %v4515_v13, %v1667_v58 }
 0x9ca   :  { %v1521_v23 = vsel %vm181_vm2, %v4585_v61, %v1500_v20  ;;  %v1531_v61 = vsub.s32 2, %v4506_v11  ;;  %v89_v20 = vld [vmem:[#allocation5 + $0x40] sm:$0xff] }
 0x9cb   :  { %3980 = vmatmul.mubr.msk.f32.vlgmr.msra.gmra.mrb[12].mxu0 %vm181_vm2, %v1343_v10 }
 0x9cc   :  { %v4282_v18 = vpop.eup %4281  ;;  %4155 = vmatpush3.bf16.msra.mxu0 %v4152_v53  ;;  %v1532_v34 = vrot.slane %v4515_v13, %v1531_v61 }
 0x9cd   :  { %v1344_v14 = vmul.f32 %v4282_v18, %v4278_v54  ;;  %4157 = vmatprep.subr.bf16.mxu0 %v4156_v7  ;;  %v1508_v22 = vpop.permute.xlu0 %1507 }
 0x9ce   :  { %v1524_v25 = vsel %vm1523_vm4, %v1521_v23, %v1508_v22  ;;  %v90_v22 = vld [vmem:[#allocation5 + $0x58] sm:$0xff] }
 0x9cf   :  { %3985 = vmatmul.mubr.msk.f32.vlgmr.msra.gmra.mrb[18].mxu1 %vm181_vm2, %v1344_v14  ;;  %v4172_v23 = vpack.c.bf16 %v90_v22, %v89_v20 }
 0x9d0   :  { %4159 = vmatpush3.bf16.msra.mxu0 %v4156_v7 }
 0xa9e   :  { %v1417_v46 = vpop.f32.mrb[12].mxu0 }
 0xa9f   :  { %1515 = vrot.lane.b32.xlu0 %v1417_v46, %s4416_s9  ;;  %v3981_v15 = vpop.f32.mrb[13].mxu0 }
 0xaa2   :  { %v1493_v16 = vpop.f32.mrb[18].mxu1 }
 0xaa3   :  { %1517 = vrot.lane.b32.xlu1 %v1493_v16, %s4416_s9  ;;  %v3986_v19 = vpop.f32.mrb[19].mxu1  ;;  %v87_v16 = vld [vmem:[#allocation5 + $0x10] sm:$0xff] }
 0xaa4   :  { %v88_v19 = vld [vmem:[#allocation5 + $0x28] sm:$0xff] }
 0xaa5   :  { %v4168_v21 = vpack.c.bf16 %v88_v19, %v87_v16  ;;  %v4747_v16 = vld [vmem:[#allocation5 + $0xc0] sm:$0xff] }
 0xaa7   :  { %4169 = vmatprep.subr.bf16.mxu0 %v4168_v21 }
 0xb11   :  { %v1516_v26 = vpop.permute.xlu0 %1515 }
 0xb12   :  { %v1527_v27 = vsel %vm1526_vm3, %v1524_v25, %v1516_v26  ;;  %v1674_v25 = vrot.slane %v4515_v13, %v1673_v24 }
 0xb13   :  { %3995 = vmatprep.mubr.msk.f32.mxu0 %vm96_vm0, %v1527_v27 }
 0xb15   :  { %v1518_v32 = vpop.permute.xlu1 %1517 }
 0xb16   :  { %v1528_v33 = vsel %vm1526_vm3, %v1525_v30, %v1518_v32 }
 0xb17   :  { %3996 = vmatmul.mubr.msk.f32.vlgmr.msra.gmra.mrb[14].mxu0 %vm96_vm0, %v1528_v33 }
 0xb18   :  { %4171 = vmatpush3.bf16.xpose.msra.mxu0 %v4168_v21 }
 0xb19   :  { %4173 = vmatprep.subr.bf16.mxu0 %v4172_v23 }
 0xb20   :  { %4175 = vmatpush3.bf16.xpose.msra.mxu0 %v4172_v23 }
 0xb21   :  { %4041 = vmatprep.subr.mxu0 %v4417_v9 }
 0xbea   :  { %v3997_v35 = vpop.f32.mrb[14].mxu0 }
 0xbeb   :  { %v1627_v36 = vadd.f32 %v3997_v35, %v1532_v34  ;;  %v1621_v37 = vpop.f32.mrb[15].mxu0 }
 0xbec   :  { %v1622_v38 = vadd.f32 %v1621_v37, %v1532_v34 }
 0xbed   :  { %v1631_v39 = vadd.f32 %v1627_v36, %v4500_v8 }
 0xbee   :  { %v1630_v63 = vadd.f32 %v1622_v38, %v4494_v6  ;;  %v83_v6 = vld [vmem:[#allocation5 + $0x8] sm:$0xff] }
 0xbef   :  { %v1635_v40 = vsel %vm96_vm0, %v1631_v39, 0.0  ;;  %v4160_v0 = vpack.c.bf16 %v84_v52, %v83_v6 }
 0xbf0   :  { %1636 = vadd.xlane.f32.xlu1 %v1635_v40  ;;  %v1632_v41 = vsel %vm96_vm0, %v1630_v63, 0.0 }
 0xbf1   :  { %1633 = vadd.xlane.f32.xlu0 %v1632_v41  ;;  %4161 = vmatprep.subr.bf16.mxu1 %v4160_v0 }
 0xbf2   :  { %4163 = vmatpush3.bf16.msra.mxu1 %v4160_v0 }
 0xbf3   :  { %4165 = vmatprep.subr.bf16.mxu1 %v4164_v3 }
 0xbf6   :  { %4167 = vmatpush3.bf16.msra.mxu1 %v4164_v3 }
 0xc7d   :  { %v1637_v42 = vpop.xlane.xlu1 %1636 }
 0xc7e   :  { %v1640_v43 = vmul.f32 0.03125, %v1637_v42  ;;  %v1634_v44 = vpop.xlane.xlu0 %1633 }
 0xc7f   :  { %v1639_v45 = vmul.f32 0.03125, %v1634_v44 }
 0xc80   :  { %v1642_v47 = vsub.f32 %v1631_v39, %v1640_v43 }
 0xc81   :  { %v1641_v49 = vsub.f32 %v1630_v63, %v1639_v45 }
 0xc82   :  { %v1644_v51 = vmul.f32 %v1642_v47, %v1642_v47 }
 0xc83   :  { %v1643_v17 = vmul.f32 %v1641_v49, %v1641_v49 }
 0xc84   :  { %v1648_v8 = vsel %vm96_vm0, %v1644_v51, 0.0 }
 0xc85   :  { %v1645_v50 = vsel %vm96_vm0, %v1643_v17, 0.0 }
 0xc86   :  { %1646 = vadd.xlane.f32.xlu0 %v1645_v50  ;;  %v1776_v50 = vsub.s32 5, %v4506_v11 }
 0xc88   :  { %v1777_v51 = vrot.slane %v4515_v13, %v1776_v50 }
 0xc8a   :  { %1649 = vadd.xlane.f32.xlu0 %v1648_v8 }
 0xd13   :  { %v1647_v5 = vpop.xlane.xlu0 %1646 }
 0xd14   :  { %v1651_v53 = vmul.f32 0.03125, %v1647_v5 }
 0xd16   :  { %v1653_v48 = vadd.f32 1e-12, %v1651_v53 }
 0xd17   :  { %v1650_v54 = vpop.xlane.xlu0 %1649 }
 0xd18   :  { %4283 = vrsqrt.f32 %v1653_v48  ;;  %v1652_v55 = vmul.f32 0.03125, %v1650_v54 }
 0xd1a   :  { %v1654_v56 = vadd.f32 1e-12, %v1652_v55 }
 0xd1c   :  { %4285 = vrsqrt.f32 %v1654_v56 }
 0xd22   :  { %v4284_v60 = vpop.eup %4283 }
 0xd23   :  { %v1657_v62 = vmul.f32 %v4284_v60, %v1641_v49 }
 0xd25   :  { %v1663_v7 = vmul.f32 %v1662_v59, %v1657_v62 }
 0xd26   :  { %v4286_v10 = vpop.eup %4285 }
 0xd27   :  { %v1658_v18 = vmul.f32 %v4286_v10, %v1642_v47  ;;  %v1669_v14 = vadd.f32 %v1668_v4, %v1663_v7  ;;  %v4737_v10 = vld [vmem:[#allocation5 + $0x78] sm:$0xff] }
 0xd29   :  { %v1664_v46 = vmul.f32 %v1662_v59, %v1658_v18  ;;  %4006 = vmatprep.mubr.msk.f32.mxu1 %vm96_vm0, %v1669_v14  ;;  %v4739_v18 = vld [vmem:[#allocation5 + $0x90] sm:$0xff] }
 0xd2b   :  { %v1670_v15 = vadd.f32 %v1668_v4, %v1664_v46  ;;  %v4241_v46 = vpack.i.bf16 %v4739_v18, %v4737_v10 }
 0xd2d   :  { %4007 = vmatmul.mubr.msk.f32.vlgmr.msra.gmra.mrb[20].mxu1 %vm96_vm0, %v1670_v15 }
 0xe00   :  { %v4008_v26 = vpop.f32.mrb[20].mxu1 }
 0xe01   :  { %v1753_v27 = vadd.f32 %v4008_v26, %v1674_v25  ;;  %v1747_v28 = vpop.f32.mrb[21].mxu1 }
 0xe02   :  { %v1748_v30 = vadd.f32 %v1747_v28, %v1674_v25  ;;  %v1883_v28 = vsub.s32 6, %v4506_v11 }
 0xe03   :  { %v1757_v32 = vmul.f32 %v1753_v27, %v1753_v27 }
 0xe04   :  { %v1756_v33 = vmul.f32 %v1748_v30, %v1748_v30 }
 0xe05   :  { %v1759_v34 = vmul.f32 %v1757_v32, %v1753_v27  ;;  %v1884_v32 = vrot.slane %v4515_v13, %v1883_v28 }
 0xe06   :  { %v1758_v35 = vmul.f32 %v1756_v33, %v1748_v30 }
 0xe07   :  { %v1761_v36 = vmul.f32 0.044715, %v1759_v34 }
 0xe08   :  { %v1760_v37 = vmul.f32 0.044715, %v1758_v35 }
 0xe09   :  { %v1763_v38 = vadd.f32 %v1761_v36, %v1753_v27 }
 0xe0a   :  { %v1762_v39 = vadd.f32 %v1760_v37, %v1748_v30 }
 0xe0b   :  { %v1765_v63 = vmul.f32 0.7978846, %v1763_v38 }
 0xe0c   :  { %v1764_v40 = vmul.f32 0.7978846, %v1762_v39 }
 0xe0d   :  { %4287 = vtanh.f32 %v1765_v63 }
 0xe0e   :  { %4289 = vtanh.f32 %v1764_v40 }
 0xe17   :  { %v4288_v41 = vpop.eup %4287 }
 0xe18   :  { %v4290_v42 = vpop.eup %4289  ;;  %v1769_v43 = vadd.f32 1.0, %v4288_v41  ;;  %v4772_v41 = vld [vmem:[#allocation5 + $0xd8] sm:$0xff] }
 0xe19   :  { %v1768_v44 = vadd.f32 1.0, %v4290_v42 }
 0xe1a   :  { %v1771_v45 = vmul.f32 0.5, %v1769_v43 }
 0xe1b   :  { %v1770_v47 = vmul.f32 0.5, %v1768_v44 }
 0xe1c   :  { %v1773_v17 = vmul.f32 %v1771_v45, %v1753_v27 }
 0xe1d   :  { %v1772_v49 = vmul.f32 %v1770_v47, %v1748_v30  ;;  %v1889_v30 = vsub.s32 7, %v4506_v11 }
 0xe1f   :  { %4017 = vmatprep.mubr.f32.mxu0 %v1772_v49  ;;  %v1890_v37 = vrot.slane %v4515_v13, %v1889_v30  ;;  %v1910_v13 = vrot.slane %v4772_v41, %v4513_v12 }
 0xe20   :  { %4018 = vmatmul.mubr.f32.vlgmr.msra.gmra.mrb[16].mxu0 %v1773_v17 }
 0xe21   :  { %4043 = vmatprep.mubr.msk.f32.mxu0 %vm4418_vm1, %v4417_v9 }
 0xef3   :  { %v4019_v8 = vpop.f32.mrb[16].mxu0 }
 0xef4   :  { %v1850_v6 = vadd.f32 %v4019_v8, %v1777_v51  ;;  %v1844_v52 = vpop.f32.mrb[17].mxu0 }
 0xef5   :  { %v1845_v0 = vadd.f32 %v1844_v52, %v1777_v51 }
 0xef6   :  { %v1854_v1 = vadd.f32 %v1850_v6, %v1670_v15  ;;  %v4745_v15 = vld [vmem:[#allocation5 + $0xa8] sm:$0xff] }
 0xef7   :  { %v1853_v2 = vadd.f32 %v1845_v0, %v1669_v14  ;;  %v4176_v14 = vpack.c.bf16 %v4739_v18, %v4737_v10  ;;  %v4246_v19 = vpack.i.bf16 %v4747_v16, %v4745_v15  ;;  %v4180_v20 = vpack.c.bf16 %v4747_v16, %v4745_v15 }
 0xef8   :  { %v1858_v3 = vsel %vm96_vm0, %v1854_v1, 0.0 }
 0xef9   :  { %1859 = vadd.xlane.f32.xlu0 %v1858_v3  ;;  %v1855_v5 = vsel %vm96_vm0, %v1853_v2, 0.0  ;;  %4177 = vmatprep.subr.bf16.mxu1 %v4176_v14 }
 0xefa   :  { %1856 = vadd.xlane.f32.xlu1 %v1855_v5  ;;  %4179 = vmatpush3.bf16.msra.mxu1 %v4176_v14 }
 0xefb   :  { %4181 = vmatprep.subr.bf16.mxu1 %v4180_v20 }
 0xefe   :  { %4183 = vmatpush3.bf16.msra.mxu1 %v4180_v20 }
 0xeff   :  { %4031 = vmatprep.subr.mxu1 %v4417_v9 }
 0xf86   :  { %v1860_v53 = vpop.xlane.xlu0 %1859 }
 0xf87   :  { %v1862_v48 = vmul.f32 0.03125, %v1860_v53  ;;  %v1857_v54 = vpop.xlane.xlu1 %1856 }
 0xf88   :  { %v1861_v55 = vmul.f32 0.03125, %v1857_v54 }
 0xf89   :  { %v1864_v56 = vsub.f32 %v1854_v1, %v1862_v48 }
 0xf8a   :  { %v1863_v59 = vsub.f32 %v1853_v2, %v1861_v55 }
 0xf8b   :  { %v1866_v60 = vmul.f32 %v1864_v56, %v1864_v56 }
 0xf8c   :  { %v1865_v62 = vmul.f32 %v1863_v59, %v1863_v59 }
 0xf8d   :  { %v1870_v4 = vsel %vm96_vm0, %v1866_v60, 0.0 }
 0xf8e   :  { %1871 = vadd.xlane.f32.xlu0 %v1870_v4  ;;  %v1867_v7 = vsel %vm96_vm0, %v1865_v62, 0.0 }
 0xf8f   :  { %1868 = vadd.xlane.f32.xlu1 %v1867_v7 }
0x101b   :  { %v1872_v21 = vpop.xlane.xlu0 %1871 }
0x101c   :  { %v1874_v22 = vmul.f32 0.03125, %v1872_v21  ;;  %v1869_v23 = vpop.xlane.xlu1 %1868 }
0x101d   :  { %v1873_v25 = vmul.f32 0.03125, %v1869_v23 }
0x101e   :  { %v1876_v26 = vadd.f32 1e-12, %v1874_v22 }
0x101f   :  { %v1875_v27 = vadd.f32 1e-12, %v1873_v25 }
0x1020   :  { %4291 = vrsqrt.f32 %v1876_v26 }
0x1021   :  { %4293 = vrsqrt.f32 %v1875_v27 }
0x102a   :  { %v4292_v33 = vpop.eup %4291 }
0x102b   :  { %v4294_v34 = vpop.eup %4293  ;;  %v1880_v35 = vmul.f32 %v4292_v33, %v1864_v56 }
0x102c   :  { %v1879_v36 = vmul.f32 %v4294_v34, %v1863_v59 }
0x102d   :  { %v1886_v38 = vmul.f32 %v1884_v32, %v1880_v35 }
0x102e   :  { %v1885_v39 = vmul.f32 %v1884_v32, %v1879_v36 }
0x102f   :  { %v4764_v40 = vadd.f32 %v1890_v37, %v1886_v38 }
0x1030   :  { %v4762_v63 = vadd.f32 %v1890_v37, %v1885_v39 }
0x1032   :  { %4028 = vmatprep.mubr.msk.f32.mxu1 %vm96_vm0, %v4762_v63 }
0x1033   :  { %4029 = vmatmul.mubr.msk.f32.vlgmr.msra.gmra.mrb[22].mxu1 %vm96_vm0, %v4764_v40 }
0x1034   :  { %4033 = vmatprep.mubr.msk.f32.mxu1 %vm4418_vm1, %v4417_v9 }
0x1106   :  { %v4030_v42 = vpop.f32.mrb[22].mxu1 }
0x1107   :  { %v4776_v43 = vadd.f32 %v4030_v42, %v1910_v13  ;;  %v1983_v44 = vpop.f32.mrb[23].mxu1 }
0x1108   :  { %v4778_v45 = vadd.f32 %v1983_v44, %v1910_v13 }
0x1109   :  { %2070 = vrot.lane.b32.xlu0 %v4776_v43, %s4419_s2 }
0x110a   :  { %1993 = vrot.lane.b32.xlu1 %v4778_v45, %s4419_s2 }
0x117b   :  { %v2071_v49 = vpop.permute.xlu0 %2070 }
0x117c   :  { %v1994_v47 = vpop.permute.xlu1 %1993 }
0x117d   :  { %4032 = vmatpush3.xpose.msk.msra.mxu1 %vm181_vm2, %v1994_v47 }
0x117e   :  { %4036 = vmatprep.subr.mxu1 %v4417_v9 }
0x1180   :  { %4034 = vmatmul.mubr.msk.f32.vlgmr.msra.gmra.mrb[24].mxu1 %vm181_vm2, %v4778_v45 }
0x1181   :  { %4037 = vmatpush3.xpose.msk.msra.mxu1 %vm181_vm2, %v2071_v49  ;;  %4038 = vmatprep.mubr.msk.f32.mxu1 %vm4418_vm1, %v4417_v9 }
0x1182   :  { %4046 = vmatprep.subr.mxu1 %v4417_v9 }
0x1184   :  { %4039 = vmatmul.mubr.msk.f32.vlgmr.msra.gmra.mrb[26].mxu1 %vm181_vm2, %v4776_v43 }
0x1185   :  { %4048 = vmatprep.mubr.msk.f32.mxu1 %vm4418_vm1, %v4417_v9 }
0x1253   :  { %v2065_v12 = vpop.f32.mrb[24].mxu1 }
0x1254   :  { %v2066_v17 = vadd.f32 %v2065_v12, %v4544_v29  ;;  %v4035_v51 = vpop.f32.mrb[25].mxu1 }
0x1256   :  { %v2146_v8 = vsel %vm181_vm2, %v2066_v17, -inf }
0x1257   :  { %2147 = vmax.xlane.f32.xlu1 %v2146_v8  ;;  %v2142_v6 = vpop.f32.mrb[26].mxu1 }
0x1258   :  { %v2143_v52 = vadd.f32 %v2142_v6, %v4547_v31  ;;  %v4040_v0 = vpop.f32.mrb[27].mxu1 }
0x125a   :  { %v2149_v1 = vsel %vm181_vm2, %v2143_v52, -inf }
0x125b   :  { %2150 = vmax.xlane.f32.xlu0 %v2149_v1 }
0x1268   :  { %2168 = vrot.lane.b32.xlu1 %v4778_v45, %s4421_s1 }
0x126c   :  { %2322 = vrot.lane.b32.xlu1 %v4778_v45, %s4422_s14 }
0x1270   :  { %2400 = vrot.lane.b32.xlu1 %v4776_v43, %s4422_s14 }
0x1271   :  { %2244 = vrot.lane.b32.xlu0 %v4776_v43, %s4421_s1 }
0x12e4   :  { %v2148_v2 = vpop.xlane.xlu1 %2147 }
0x12e5   :  { %v2152_v3 = vsub.f32 %v2066_v17, %v2148_v2 }
0x12e7   :  { %v2154_v5 = vmul.f32 1.442695, %v2152_v3 }
0x12e8   :  { %v2169_v53 = vpop.permute.xlu1 %2168  ;;  %v2151_v48 = vpop.xlane.xlu0 %2150 }
0x12e9   :  { %4295 = vpow2.f32 %v2154_v5  ;;  %v2153_v54 = vsub.f32 %v2143_v52, %v2151_v48  ;;  %4042 = vmatpush3.msra.mxu0 %v2169_v53 }
0x12ea   :  { %4051 = vmatprep.subr.mxu0 %v4417_v9 }
0x12eb   :  { %v2156_v55 = vmul.f32 1.442695, %v2153_v54 }
0x12ec   :  { %v2245_v56 = vpop.permute.xlu0 %2244  ;;  %v2323_v7 = vpop.permute.xlu1 %2322 }
0x12ed   :  { %4297 = vpow2.f32 %v2156_v55  ;;  %4047 = vmatpush3.msra.mxu1 %v2245_v56 }
0x12ee   :  { %4056 = vmatprep.subr.mxu1 %v4417_v9 }
0x12f0   :  { %v2401_v14 = vpop.permute.xlu1 %2400 }
0x12f3   :  { %v4296_v59 = vpop.eup %4295 }
0x12f4   :  { %v2158_v60 = vsel %vm181_vm2, %v4296_v59, 0.0 }
0x12f5   :  { %2159 = vadd.xlane.f32.xlu1 %v2158_v60 }
0x12f7   :  { %v4298_v62 = vpop.eup %4297 }
0x12f8   :  { %v2161_v4 = vsel %vm181_vm2, %v4298_v62, 0.0 }
0x12f9   :  { %2162 = vadd.xlane.f32.xlu0 %v2161_v4 }
0x1306   :  { %2398 = vrot.lane.b32.xlu1 %v4776_v43, %s4423_s15 }
0x130f   :  { %2320 = vrot.lane.b32.xlu0 %v4778_v45, %s4423_s15 }
0x1382   :  { %v2160_v20 = vpop.xlane.xlu1 %2159 }
0x1383   :  { %4299 = vrcp.f32 %v2160_v20 }
0x1386   :  { %v2163_v21 = vpop.xlane.xlu0 %2162  ;;  %v2399_v32 = vpop.permute.xlu1 %2398 }
0x1387   :  { %4301 = vrcp.f32 %v2163_v21 }
0x138a   :  { %v2321_v27 = vpop.permute.xlu0 %2320 }
0x138d   :  { %v4300_v22 = vpop.eup %4299 }
0x138e   :  { %v2166_v23 = vmul.f32 %v4300_v22, %v4296_v59 }
0x1390   :  { %4044 = vmatmul.mubr.msk.f32.vlgmr.msra.gmra.mrb[18].mxu0 %vm181_vm2, %v2166_v23 }
0x1391   :  { %v4302_v25 = vpop.eup %4301  ;;  %4052 = vmatpush3.xpose.msk.msra.mxu0 %vm181_vm2, %v2323_v7  ;;  %4053 = vmatprep.mubr.msk.f32.mxu0 %vm4418_vm1, %v4417_v9 }
0x1392   :  { %v2167_v26 = vmul.f32 %v4302_v25, %v4298_v62  ;;  %4061 = vmatprep.subr.mxu0 %v4417_v9 }
0x1394   :  { %4049 = vmatmul.mubr.msk.f32.vlgmr.msra.gmra.mrb[28].mxu1 %vm181_vm2, %v2167_v26  ;;  %4054 = vmatmul.mubr.msk.f32.vlgmr.msra.gmra.mrb[20].mxu0 %vm181_vm2, %v2321_v27 }
0x1395   :  { %4057 = vmatpush3.xpose.msk.msra.mxu1 %vm181_vm2, %v2401_v14  ;;  %4058 = vmatprep.mubr.msk.f32.mxu1 %vm4418_vm1, %v4417_v9 }
0x1396   :  { %4066 = vmatprep.subr.mxu1 %v4417_v9  ;;  %4063 = vmatprep.mubr.msk.f32.mxu0 %vm4418_vm1, %v4417_v9 }
0x1398   :  { %4059 = vmatmul.mubr.msk.f32.vlgmr.msra.gmra.mrb[30].mxu1 %vm181_vm2, %v2399_v32 }
0x1399   :  { %4068 = vmatprep.mubr.msk.f32.mxu1 %vm4418_vm1, %v4417_v9 }
0x1463   :  { %v4832_v33 = vpop.f32.mrb[18].mxu0 }
0x1464   :  { %v4045_v34 = vpop.f32.mrb[19].mxu0 }
0x1467   :  { %v4834_v35 = vpop.f32.mrb[28].mxu1  ;;  %v2394_v36 = vpop.f32.mrb[20].mxu0 }
0x1468   :  { %v2395_v37 = vadd.f32 %v2394_v36, %v4544_v29  ;;  %v4050_v38 = vpop.f32.mrb[29].mxu1  ;;  %v4055_v39 = vpop.f32.mrb[21].mxu0 }
0x146a   :  { %v2476_v13 = vsel %vm181_vm2, %v2395_v37, -inf }
0x146b   :  { %2477 = vmax.xlane.f32.xlu0 %v2476_v13  ;;  %v2472_v42 = vpop.f32.mrb[30].mxu1 }
0x146c   :  { %v2473_v44 = vadd.f32 %v2472_v42, %v4547_v31  ;;  %v4060_v47 = vpop.f32.mrb[31].mxu1 }
0x146e   :  { %v2479_v49 = vsel %vm181_vm2, %v2473_v44, -inf }
0x146f   :  { %2480 = vmax.xlane.f32.xlu1 %v2479_v49 }
0x1480   :  { %2498 = vrot.lane.b32.xlu1 %v4778_v45, %s4424_s16 }
0x1481   :  { %2574 = vrot.lane.b32.xlu0 %v4776_v43, %s4424_s16 }
0x1484   :  { %2652 = vrot.lane.b32.xlu1 %v4778_v45, %s4425_s17 }
0x1488   :  { %2730 = vrot.lane.b32.xlu1 %v4776_v43, %s4425_s17 }
0x148c   :  { %2728 = vrot.lane.b32.xlu1 %v4776_v43, %s4426_s18 }
0x14f8   :  { %v2478_v12 = vpop.xlane.xlu0 %2477 }
0x14f9   :  { %v2482_v17 = vsub.f32 %v2395_v37, %v2478_v12 }
0x14fb   :  { %v2484_v51 = vmul.f32 1.442695, %v2482_v17 }
0x14fc   :  { %v2575_v8 = vpop.permute.xlu0 %2574  ;;  %v2481_v6 = vpop.xlane.xlu1 %2480 }
0x14fd   :  { %4303 = vpow2.f32 %v2484_v51  ;;  %v2483_v52 = vsub.f32 %v2473_v44, %v2481_v6  ;;  %4067 = vmatpush3.msra.mxu1 %v2575_v8 }
0x14fe   :  { %4076 = vmatprep.subr.mxu1 %v4417_v9 }
0x14ff   :  { %v2486_v0 = vmul.f32 1.442695, %v2483_v52 }
0x1500   :  { %v2499_v1 = vpop.permute.xlu1 %2498 }
0x1501   :  { %4305 = vpow2.f32 %v2486_v0  ;;  %4062 = vmatpush3.msra.mxu0 %v2499_v1 }
0x1502   :  { %4071 = vmatprep.subr.mxu0 %v4417_v9 }
0x1504   :  { %v2653_v55 = vpop.permute.xlu1 %2652 }
0x1507   :  { %v4304_v2 = vpop.eup %4303 }
0x1508   :  { %v2488_v3 = vsel %vm181_vm2, %v4304_v2, 0.0  ;;  %v2731_v62 = vpop.permute.xlu1 %2730 }
0x1509   :  { %2489 = vadd.xlane.f32.xlu0 %v2488_v3 }
0x150b   :  { %v4306_v5 = vpop.eup %4305 }
0x150c   :  { %v2491_v53 = vsel %vm181_vm2, %v4306_v5, 0.0  ;;  %v2729_v14 = vpop.permute.xlu1 %2728 }
0x150d   :  { %2492 = vadd.xlane.f32.xlu0 %v2491_v53 }
0x1523   :  { %2650 = vrot.lane.b32.xlu0 %v4778_v45, %s4426_s18 }
0x1596   :  { %v2490_v48 = vpop.xlane.xlu0 %2489 }
0x1597   :  { %4307 = vrcp.f32 %v2490_v48 }
0x159a   :  { %v2493_v54 = vpop.xlane.xlu0 %2492 }
0x159b   :  { %4309 = vrcp.f32 %v2493_v54 }
0x159e   :  { %v2651_v7 = vpop.permute.xlu0 %2650 }
0x15a1   :  { %v4308_v56 = vpop.eup %4307 }
0x15a2   :  { %v2496_v59 = vmul.f32 %v4308_v56, %v4304_v2 }
0x15a4   :  { %4064 = vmatmul.mubr.msk.f32.vlgmr.msra.gmra.mrb[22].mxu0 %vm181_vm2, %v2496_v59 }
0x15a5   :  { %v4310_v60 = vpop.eup %4309  ;;  %4072 = vmatpush3.xpose.msk.msra.mxu0 %vm181_vm2, %v2653_v55  ;;  %4073 = vmatprep.mubr.msk.f32.mxu0 %vm4418_vm1, %v4417_v9 }
0x15a6   :  { %v2497_v4 = vmul.f32 %v4310_v60, %v4306_v5  ;;  %4081 = vmatprep.subr.mxu0 %v4417_v9 }
0x15a8   :  { %4069 = vmatmul.mubr.msk.f32.vlgmr.msra.gmra.mrb[32].mxu1 %vm181_vm2, %v2497_v4  ;;  %4074 = vmatmul.mubr.msk.f32.vlgmr.msra.gmra.mrb[24].mxu0 %vm181_vm2, %v2651_v7 }
0x15a9   :  { %4077 = vmatpush3.xpose.msk.msra.mxu1 %vm181_vm2, %v2731_v62  ;;  %4078 = vmatprep.mubr.msk.f32.mxu1 %vm4418_vm1, %v4417_v9 }
0x15aa   :  { %4086 = vmatprep.subr.mxu1 %v4417_v9  ;;  %4083 = vmatprep.mubr.msk.f32.mxu0 %vm4418_vm1, %v4417_v9 }
0x15ac   :  { %4079 = vmatmul.mubr.msk.f32.vlgmr.msra.gmra.mrb[34].mxu1 %vm181_vm2, %v2729_v14 }
0x15ad   :  { %4088 = vmatprep.mubr.msk.f32.mxu1 %vm4418_vm1, %v4417_v9 }
0x1677   :  { %v4872_v20 = vpop.f32.mrb[22].mxu0 }
0x1678   :  { %v4065_v21 = vpop.f32.mrb[23].mxu0 }
0x167b   :  { %v4874_v22 = vpop.f32.mrb[32].mxu1  ;;  %v2724_v23 = vpop.f32.mrb[24].mxu0 }
0x167c   :  { %v2725_v25 = vadd.f32 %v2724_v23, %v4544_v29  ;;  %v4070_v26 = vpop.f32.mrb[33].mxu1  ;;  %v4075_v27 = vpop.f32.mrb[25].mxu0 }
0x167e   :  { %v2806_v32 = vsel %vm181_vm2, %v2725_v25, -inf }
0x167f   :  { %2807 = vmax.xlane.f32.xlu0 %v2806_v32  ;;  %v2802_v34 = vpop.f32.mrb[34].mxu1 }
0x1680   :  { %v2803_v36 = vadd.f32 %v2802_v34, %v4547_v31  ;;  %v4080_v37 = vpop.f32.mrb[35].mxu1 }
0x1682   :  { %v2809_v38 = vsel %vm181_vm2, %v2803_v36, -inf }
0x1683   :  { %2810 = vmax.xlane.f32.xlu1 %v2809_v38 }
0x1694   :  { %2828 = vrot.lane.b32.xlu1 %v4778_v45, %s4427_s19 }
0x1695   :  { %2904 = vrot.lane.b32.xlu0 %v4776_v43, %s4427_s19 }
0x1698   :  { %2982 = vrot.lane.b32.xlu1 %v4778_v45, %s4428_s20 }
0x169c   :  { %3060 = vrot.lane.b32.xlu1 %v4776_v43, %s4428_s20 }
0x16a0   :  { %3058 = vrot.lane.b32.xlu1 %v4776_v43, %s4429_s21 }
0x170c   :  { %v2808_v39 = vpop.xlane.xlu0 %2807 }
0x170d   :  { %v2812_v13 = vsub.f32 %v2725_v25, %v2808_v39 }
0x170f   :  { %v2814_v42 = vmul.f32 1.442695, %v2812_v13 }
0x1710   :  { %v2905_v44 = vpop.permute.xlu0 %2904  ;;  %v2811_v47 = vpop.xlane.xlu1 %2810 }
0x1711   :  { %4311 = vpow2.f32 %v2814_v42  ;;  %v2813_v49 = vsub.f32 %v2803_v36, %v2811_v47  ;;  %4087 = vmatpush3.msra.mxu1 %v2905_v44 }
0x1712   :  { %4096 = vmatprep.subr.mxu1 %v4417_v9 }
0x1713   :  { %v2816_v12 = vmul.f32 1.442695, %v2813_v49 }
0x1714   :  { %v2829_v17 = vpop.permute.xlu1 %2828 }
0x1715   :  { %4313 = vpow2.f32 %v2816_v12  ;;  %4082 = vmatpush3.msra.mxu0 %v2829_v17 }
0x1716   :  { %4091 = vmatprep.subr.mxu0 %v4417_v9 }
0x1718   :  { %v2983_v2 = vpop.permute.xlu1 %2982 }
0x171b   :  { %v4312_v51 = vpop.eup %4311 }
0x171c   :  { %v2818_v8 = vsel %vm181_vm2, %v4312_v51, 0.0  ;;  %v3061_v48 = vpop.permute.xlu1 %3060 }
0x171d   :  { %2819 = vadd.xlane.f32.xlu0 %v2818_v8 }
0x171f   :  { %v4314_v6 = vpop.eup %4313 }
0x1720   :  { %v2821_v52 = vsel %vm181_vm2, %v4314_v6, 0.0  ;;  %v3059_v56 = vpop.permute.xlu1 %3058 }
0x1721   :  { %2822 = vadd.xlane.f32.xlu0 %v2821_v52 }
0x1737   :  { %2980 = vrot.lane.b32.xlu0 %v4778_v45, %s4429_s21 }
0x17aa   :  { %v2820_v0 = vpop.xlane.xlu0 %2819 }
0x17ab   :  { %4315 = vrcp.f32 %v2820_v0 }
0x17ae   :  { %v2823_v1 = vpop.xlane.xlu0 %2822 }
0x17af   :  { %4317 = vrcp.f32 %v2823_v1 }
0x17b2   :  { %v2981_v55 = vpop.permute.xlu0 %2980 }
0x17b5   :  { %v4316_v3 = vpop.eup %4315 }
0x17b6   :  { %v2826_v5 = vmul.f32 %v4316_v3, %v4312_v51 }
0x17b8   :  { %4084 = vmatmul.mubr.msk.f32.vlgmr.msra.gmra.mrb[26].mxu0 %vm181_vm2, %v2826_v5 }
0x17b9   :  { %v4318_v53 = vpop.eup %4317  ;;  %4092 = vmatpush3.xpose.msk.msra.mxu0 %vm181_vm2, %v2983_v2  ;;  %4093 = vmatprep.mubr.msk.f32.mxu0 %vm4418_vm1, %v4417_v9 }
0x17ba   :  { %v2827_v54 = vmul.f32 %v4318_v53, %v4314_v6  ;;  %4101 = vmatprep.subr.mxu0 %v4417_v9 }
0x17bc   :  { %4089 = vmatmul.mubr.msk.f32.vlgmr.msra.gmra.mrb[36].mxu1 %vm181_vm2, %v2827_v54  ;;  %4094 = vmatmul.mubr.msk.f32.vlgmr.msra.gmra.mrb[28].mxu0 %vm181_vm2, %v2981_v55 }
0x17bd   :  { %4097 = vmatpush3.xpose.msk.msra.mxu1 %vm181_vm2, %v3061_v48  ;;  %4098 = vmatprep.mubr.msk.f32.mxu1 %vm4418_vm1, %v4417_v9 }
0x17be   :  { %4106 = vmatprep.subr.mxu1 %v4417_v9  ;;  %4103 = vmatprep.mubr.msk.f32.mxu0 %vm4418_vm1, %v4417_v9 }
0x17c0   :  { %4099 = vmatmul.mubr.msk.f32.vlgmr.msra.gmra.mrb[38].mxu1 %vm181_vm2, %v3059_v56 }
0x17c1   :  { %4108 = vmatprep.mubr.msk.f32.mxu1 %vm4418_vm1, %v4417_v9 }
0x188b   :  { %v2900_v59 = vpop.f32.mrb[26].mxu0 }
0x188c   :  { %v4085_v60 = vpop.f32.mrb[27].mxu0 }
0x188f   :  { %v2976_v62 = vpop.f32.mrb[36].mxu1  ;;  %v3054_v4 = vpop.f32.mrb[28].mxu0 }
0x1890   :  { %v3055_v7 = vadd.f32 %v3054_v4, %v4544_v29  ;;  %v4090_v14 = vpop.f32.mrb[37].mxu1  ;;  %v4095_v21 = vpop.f32.mrb[29].mxu0 }
0x1892   :  { %v3136_v23 = vsel %vm181_vm2, %v3055_v7, -inf }
0x1893   :  { %3137 = vmax.xlane.f32.xlu0 %v3136_v23  ;;  %v3132_v25 = vpop.f32.mrb[38].mxu1 }
0x1894   :  { %v3133_v26 = vadd.f32 %v3132_v25, %v4547_v31  ;;  %v4100_v27 = vpop.f32.mrb[39].mxu1 }
0x1896   :  { %v3139_v32 = vsel %vm181_vm2, %v3133_v26, -inf }
0x1897   :  { %3140 = vmax.xlane.f32.xlu1 %v3139_v32 }
0x18a8   :  { %3158 = vrot.lane.b32.xlu1 %v4778_v45, %s4430_s24 }
0x18ac   :  { %4242 = vrot.lane.b32.xlu1 %v4241_v46, %s4431_s25 }
0x18b0   :  { %4247 = vrot.lane.b32.xlu1 %v4246_v19, %s4431_s25 }
0x18b4   :  { %3314 = vrot.lane.b32.xlu1 %v4874_v22, %s4413_s23 }
0x18b8   :  { %3322 = vrot.lane.b32.xlu1 %v2976_v62, %s4432_s26 }
0x1920   :  { %v3138_v9 = vpop.xlane.xlu0 %3137 }
0x1921   :  { %v3142_v29 = vsub.f32 %v3055_v7, %v3138_v9 }
0x1923   :  { %v3144_v31 = vmul.f32 1.442695, %v3142_v29 }
0x1924   :  { %v3141_v34 = vpop.xlane.xlu1 %3140 }
0x1925   :  { %4319 = vpow2.f32 %v3144_v31  ;;  %v3143_v45 = vsub.f32 %v3133_v26, %v3141_v34 }
0x1927   :  { %v3146_v36 = vmul.f32 1.442695, %v3143_v45 }
0x1928   :  { %v3159_v37 = vpop.permute.xlu1 %3158 }
0x1929   :  { %4321 = vpow2.f32 %v3146_v36  ;;  %4102 = vmatpush3.msra.mxu0 %v3159_v37  ;;  %v1899_v37 = vld [vmem:[#allocation5 + $0x98] sm:$0xff] }
0x192c   :  { %v4243_v10 = vpop.permute.xlu1 %4242 }
0x192d   :  { %v4245_v18 = vunpack.i.h.bf16 %v4243_v10  ;;  %v4244_v46 = vunpack.i.l.bf16 %v4243_v10 }
0x192f   :  { %v4320_v15 = vpop.eup %4319  ;;  %v4184_v16 = vpack.c.bf16 %v4245_v18, %v4244_v46  ;;  %v1900_v18 = vld [vmem:[#allocation5 + $0xb0] sm:$0xff]  ;;  %v1901_v46 = vld [vmem:[#allocation5 + $0xc8] sm:$0xff] }
0x1930   :  { %v3148_v19 = vsel %vm181_vm2, %v4320_v15, 0.0  ;;  %v4248_v42 = vpop.permute.xlu1 %4247 }
0x1931   :  { %3149 = vadd.xlane.f32.xlu0 %v3148_v19  ;;  %4185 = vmatprep.subr.bf16.mxu0 %v4184_v16  ;;  %v4250_v44 = vunpack.i.h.bf16 %v4248_v42  ;;  %v4249_v47 = vunpack.i.l.bf16 %v4248_v42  ;;  %v3472_v42 = vrot.slane %v4772_v41, %v1661_v57 }
0x1933   :  { %v4322_v22 = vpop.eup %4321  ;;  %v4188_v17 = vpack.c.bf16 %v4250_v44, %v4249_v47 }
0x1934   :  { %v3151_v38 = vsel %vm181_vm2, %v4322_v22, 0.0  ;;  %v3315_v2 = vpop.permute.xlu1 %3314 }
0x1935   :  { %3152 = vadd.xlane.f32.xlu0 %v3151_v38  ;;  %v3335_v56 = vsel %vm181_vm2, %v4834_v35, %v3315_v2 }
0x1938   :  { %v3323_v53 = vpop.permute.xlu1 %3322 }
0x194b   :  { %3234 = vrot.lane.b32.xlu0 %v4776_v43, %s4430_s24 }
0x194f   :  { %3312 = vrot.lane.b32.xlu0 %v4872_v20, %s4413_s23 }
0x1953   :  { %3320 = vrot.lane.b32.xlu0 %v2900_v59, %s4432_s26  ;;  %v3337_v59 = vsel %vm1523_vm4, %v3335_v56, %v3323_v53 }
0x19be   :  { %v3150_v39 = vpop.xlane.xlu0 %3149 }
0x19bf   :  { %4323 = vrcp.f32 %v3150_v39 }
0x19c2   :  { %v3153_v13 = vpop.xlane.xlu0 %3152 }
0x19c3   :  { %4325 = vrcp.f32 %v3153_v13 }
0x19c6   :  { %v3235_v49 = vpop.permute.xlu0 %3234 }
0x19c7   :  { %4107 = vmatpush3.msra.mxu1 %v3235_v49  ;;  %v3478_v49 = vrot.slane %v4772_v41, %v1667_v58  ;;  %v3484_v58 = vrot.slane %v4772_v41, %v1673_v24 }
0x19c9   :  { %v4324_v12 = vpop.eup %4323 }
0x19ca   :  { %v3156_v51 = vmul.f32 %v4324_v12, %v4320_v15  ;;  %v3313_v1 = vpop.permute.xlu0 %3312  ;;  %v4196_v15 = vpack.c.bf16 %v1901_v46, %v1900_v18 }
0x19cb   :  { %v3334_v5 = vsel %vm181_vm2, %v4832_v33, %v3313_v1  ;;  %v3343_v33 = vrot.slane %v4772_v41, %v1531_v61  ;;  %v1905_v1 = vld [vmem:[#allocation5 + $0xd0] sm:$0xff] }
0x19cc   :  { %4104 = vmatmul.mubr.msk.f32.vlgmr.msra.gmra.mrb[30].mxu0 %vm181_vm2, %v3156_v51 }
0x19cd   :  { %v4326_v43 = vpop.eup %4325  ;;  %4187 = vmatpush3.bf16.msra.mxu0 %v4184_v16 }
0x19ce   :  { %v3157_v8 = vmul.f32 %v4326_v43, %v4322_v22  ;;  %4189 = vmatprep.subr.bf16.mxu0 %v4188_v17  ;;  %v3321_v3 = vpop.permute.xlu0 %3320 }
0x19cf   :  { %v3336_v48 = vsel %vm1523_vm4, %v3334_v5, %v3321_v3 }
0x19d0   :  { %4109 = vmatmul.mubr.msk.f32.vlgmr.msra.gmra.mrb[40].mxu1 %vm181_vm2, %v3157_v8 }
0x19d1   :  { %4191 = vmatpush3.bf16.msra.mxu0 %v4188_v17 }
0x1a9f   :  { %v3230_v20 = vpop.f32.mrb[30].mxu0 }
0x1aa0   :  { %3328 = vrot.lane.b32.xlu0 %v3230_v20, %s4416_s9  ;;  %v4105_v6 = vpop.f32.mrb[31].mxu0 }
0x1aa1   :  { %v1902_v6 = vld [vmem:[#allocation5 + $0x88] sm:$0xff] }
0x1aa3   :  { %v3306_v52 = vpop.f32.mrb[40].mxu1 }
0x1aa4   :  { %3330 = vrot.lane.b32.xlu1 %v3306_v52, %s4416_s9  ;;  %v4110_v0 = vpop.f32.mrb[41].mxu1  ;;  %v1903_v52 = vld [vmem:[#allocation5 + $0xa0] sm:$0xff] }
0x1aa5   :  { %v1904_v0 = vld [vmem:[#allocation5 + $0xb8] sm:$0xff]  ;;  %v4200_v57 = vpack.c.bf16 %v1903_v52, %v1902_v6 }
0x1aa6   :  { %v4204_v2 = vpack.c.bf16 %v1905_v1, %v1904_v0 }
0x1aa7   :  { %4201 = vmatprep.subr.bf16.mxu0 %v4200_v57 }
0x1b12   :  { %v3329_v54 = vpop.permute.xlu0 %3328 }
0x1b13   :  { %v3338_v55 = vsel %vm1526_vm3, %v3336_v48, %v3329_v54 }
0x1b14   :  { %4119 = vmatprep.mubr.msk.f32.mxu0 %vm96_vm0, %v3338_v55 }
0x1b16   :  { %v3331_v60 = vpop.permute.xlu1 %3330 }
0x1b17   :  { %v3339_v62 = vsel %vm1526_vm3, %v3337_v59, %v3331_v60 }
0x1b18   :  { %4120 = vmatmul.mubr.msk.f32.vlgmr.msra.gmra.mrb[32].mxu0 %vm96_vm0, %v3339_v62 }
0x1b19   :  { %4203 = vmatpush3.bf16.xpose.msra.mxu0 %v4200_v57 }
0x1b1a   :  { %4205 = vmatprep.subr.bf16.mxu0 %v4204_v2 }
0x1b21   :  { %4207 = vmatpush3.bf16.xpose.msra.mxu0 %v4204_v2 }
0x1beb   :  { %v4121_v4 = vpop.f32.mrb[32].mxu0 }
0x1bec   :  { %v3438_v7 = vadd.f32 %v4121_v4, %v3343_v33  ;;  %v3432_v14 = vpop.f32.mrb[33].mxu0 }
0x1bed   :  { %v3433_v21 = vadd.f32 %v3432_v14, %v3343_v33 }
0x1bee   :  { %v3442_v23 = vadd.f32 %v3438_v7, %v4764_v40 }
0x1bef   :  { %v3441_v25 = vadd.f32 %v3433_v21, %v4762_v63  ;;  %v1898_v63 = vld [vmem:[#allocation5 + $0x80] sm:$0xff] }
0x1bf0   :  { %v3446_v35 = vsel %vm96_vm0, %v3442_v23, 0.0  ;;  %v4192_v10 = vpack.c.bf16 %v1899_v37, %v1898_v63 }
0x1bf1   :  { %3447 = vadd.xlane.f32.xlu1 %v3446_v35  ;;  %v3443_v26 = vsel %vm96_vm0, %v3441_v25, 0.0 }
0x1bf2   :  { %3444 = vadd.xlane.f32.xlu0 %v3443_v26  ;;  %4193 = vmatprep.subr.bf16.mxu1 %v4192_v10 }
0x1bf3   :  { %4195 = vmatpush3.bf16.msra.mxu1 %v4192_v10 }
0x1bf4   :  { %4197 = vmatprep.subr.bf16.mxu1 %v4196_v15 }
0x1bf7   :  { %4199 = vmatpush3.bf16.msra.mxu1 %v4196_v15 }
0x1c7e   :  { %v3448_v27 = vpop.xlane.xlu1 %3447 }
0x1c7f   :  { %v3450_v32 = vmul.f32 0.03125, %v3448_v27  ;;  %v3445_v9 = vpop.xlane.xlu0 %3444 }
0x1c80   :  { %v3449_v29 = vmul.f32 0.03125, %v3445_v9  ;;  %v3587_v9 = vrot.slane %v4772_v41, %v1776_v50 }
0x1c81   :  { %v3452_v31 = vsub.f32 %v3442_v23, %v3450_v32 }
0x1c82   :  { %v3451_v61 = vsub.f32 %v3441_v25, %v3449_v29 }
0x1c83   :  { %v3454_v36 = vmul.f32 %v3452_v31, %v3452_v31 }
0x1c84   :  { %v3453_v34 = vmul.f32 %v3451_v61, %v3451_v61 }
0x1c85   :  { %v3458_v40 = vsel %vm96_vm0, %v3454_v36, 0.0 }
0x1c86   :  { %v3455_v45 = vsel %vm96_vm0, %v3453_v34, 0.0 }
0x1c87   :  { %3456 = vadd.xlane.f32.xlu0 %v3455_v45 }
0x1c8b   :  { %3459 = vadd.xlane.f32.xlu0 %v3458_v40 }
0x1d14   :  { %v3457_v16 = vpop.xlane.xlu0 %3456 }
0x1d15   :  { %v3461_v19 = vmul.f32 0.03125, %v3457_v16 }
0x1d17   :  { %v3463_v22 = vadd.f32 1e-12, %v3461_v19 }
0x1d18   :  { %v3460_v38 = vpop.xlane.xlu0 %3459 }
0x1d19   :  { %4327 = vrsqrt.f32 %v3463_v22  ;;  %v3462_v39 = vmul.f32 0.03125, %v3460_v38 }
0x1d1b   :  { %v3464_v13 = vadd.f32 1e-12, %v3462_v39 }
0x1d1d   :  { %4329 = vrsqrt.f32 %v3464_v13 }
0x1d23   :  { %v4328_v44 = vpop.eup %4327 }
0x1d24   :  { %v3467_v47 = vmul.f32 %v4328_v44, %v3451_v61 }
0x1d26   :  { %v3473_v12 = vmul.f32 %v3472_v42, %v3467_v47 }
0x1d27   :  { %v4330_v17 = vpop.eup %4329 }
0x1d28   :  { %v3468_v51 = vmul.f32 %v4330_v17, %v3452_v31  ;;  %v3479_v43 = vadd.f32 %v3478_v49, %v3473_v12  ;;  %v3694_v12 = vrot.slane %v4772_v41, %v1883_v28 }
0x1d2a   :  { %v3474_v8 = vmul.f32 %v3472_v42, %v3468_v51  ;;  %4130 = vmatprep.mubr.msk.f32.mxu1 %vm96_vm0, %v3479_v43 }
0x1d2c   :  { %v3480_v20 = vadd.f32 %v3478_v49, %v3474_v8  ;;  %v3700_v8 = vrot.slane %v4772_v41, %v1889_v30 }
0x1d2e   :  { %4131 = vmatmul.mubr.msk.f32.vlgmr.msra.gmra.mrb[42].mxu1 %vm96_vm0, %v3480_v20 }
0x1e01   :  { %v4132_v3 = vpop.f32.mrb[42].mxu1 }
0x1e02   :  { %v3563_v5 = vadd.f32 %v4132_v3, %v3484_v58  ;;  %v3557_v53 = vpop.f32.mrb[43].mxu1 }
0x1e03   :  { %v3558_v48 = vadd.f32 %v3557_v53, %v3484_v58 }
0x1e04   :  { %v3567_v54 = vmul.f32 %v3563_v5, %v3563_v5 }
0x1e05   :  { %v3566_v55 = vmul.f32 %v3558_v48, %v3558_v48 }
0x1e06   :  { %v3569_v56 = vmul.f32 %v3567_v54, %v3563_v5 }
0x1e07   :  { %v3568_v59 = vmul.f32 %v3566_v55, %v3558_v48 }
0x1e08   :  { %v3571_v60 = vmul.f32 0.044715, %v3569_v56 }
0x1e09   :  { %v3570_v62 = vmul.f32 0.044715, %v3568_v59 }
0x1e0a   :  { %v3573_v33 = vadd.f32 %v3571_v60, %v3563_v5 }
0x1e0b   :  { %v3572_v4 = vadd.f32 %v3570_v62, %v3558_v48 }
0x1e0c   :  { %v3575_v7 = vmul.f32 0.7978846, %v3573_v33 }
0x1e0d   :  { %v3574_v14 = vmul.f32 0.7978846, %v3572_v4 }
0x1e0e   :  { %4331 = vtanh.f32 %v3575_v7 }
0x1e0f   :  { %4333 = vtanh.f32 %v3574_v14 }
0x1e18   :  { %v4332_v21 = vpop.eup %4331 }
0x1e19   :  { %v4334_v23 = vpop.eup %4333  ;;  %v3579_v25 = vadd.f32 1.0, %v4332_v21 }
0x1e1a   :  { %v3578_v24 = vadd.f32 1.0, %v4334_v23 }
0x1e1b   :  { %v3581_v35 = vmul.f32 0.5, %v3579_v25 }
0x1e1c   :  { %v3580_v26 = vmul.f32 0.5, %v3578_v24 }
0x1e1d   :  { %v3583_v32 = vmul.f32 %v3581_v35, %v3563_v5 }
0x1e1e   :  { %v3582_v27 = vmul.f32 %v3580_v26, %v3558_v48 }
0x1e20   :  { %4141 = vmatprep.mubr.f32.mxu0 %v3582_v27 }
0x1e21   :  { %4142 = vmatmul.mubr.f32.vlgmr.msra.gmra.mrb[34].mxu0 %v3583_v32 }
0x1ef4   :  { %v4143_v29 = vpop.f32.mrb[34].mxu0 }
0x1ef5   :  { %v3660_v31 = vadd.f32 %v4143_v29, %v3587_v9  ;;  %v3654_v61 = vpop.f32.mrb[35].mxu0 }
0x1ef6   :  { %v3655_v34 = vadd.f32 %v3654_v61, %v3587_v9 }
0x1ef7   :  { %v3664_v45 = vadd.f32 %v3660_v31, %v3480_v20 }
0x1ef8   :  { %v3663_v36 = vadd.f32 %v3655_v34, %v3479_v43 }
0x1ef9   :  { %v3668_v40 = vsel %vm96_vm0, %v3664_v45, 0.0 }
0x1efa   :  { %3669 = vadd.xlane.f32.xlu0 %v3668_v40  ;;  %v3665_v63 = vsel %vm96_vm0, %v3663_v36, 0.0 }
0x1efb   :  { %3666 = vadd.xlane.f32.xlu1 %v3665_v63 }
0x1f87   :  { %v3670_v37 = vpop.xlane.xlu0 %3669 }
0x1f88   :  { %v3672_v10 = vmul.f32 0.03125, %v3670_v37  ;;  %v3667_v18 = vpop.xlane.xlu1 %3666 }
0x1f89   :  { %v3671_v46 = vmul.f32 0.03125, %v3667_v18 }
0x1f8a   :  { %v3674_v15 = vsub.f32 %v3664_v45, %v3672_v10 }
0x1f8b   :  { %v3673_v16 = vsub.f32 %v3663_v36, %v3671_v46 }
0x1f8c   :  { %v3676_v19 = vmul.f32 %v3674_v15, %v3674_v15 }
0x1f8d   :  { %v3675_v50 = vmul.f32 %v3673_v16, %v3673_v16 }
0x1f8e   :  { %v3680_v22 = vsel %vm96_vm0, %v3676_v19, 0.0 }
0x1f8f   :  { %3681 = vadd.xlane.f32.xlu0 %v3680_v22  ;;  %v3677_v38 = vsel %vm96_vm0, %v3675_v50, 0.0 }
0x1f90   :  { %3678 = vadd.xlane.f32.xlu1 %v3677_v38 }
0x201c   :  { %v3682_v39 = vpop.xlane.xlu0 %3681 }
0x201d   :  { %v3684_v13 = vmul.f32 0.03125, %v3682_v39  ;;  %v3679_v42 = vpop.xlane.xlu1 %3678 }
0x201e   :  { %v3683_v44 = vmul.f32 0.03125, %v3679_v42 }
0x201f   :  { %v3686_v47 = vadd.f32 1e-12, %v3684_v13 }
0x2020   :  { %v3685_v49 = vadd.f32 1e-12, %v3683_v44 }
0x2021   :  { %4335 = vrsqrt.f32 %v3686_v47 }
0x2022   :  { %4337 = vrsqrt.f32 %v3685_v49 }
0x202b   :  { %v4336_v17 = vpop.eup %4335 }
0x202c   :  { %v4338_v51 = vpop.eup %4337  ;;  %v3690_v43 = vmul.f32 %v4336_v17, %v3674_v15 }
0x202d   :  { %v3689_v20 = vmul.f32 %v4338_v51, %v3673_v16 }
0x202e   :  { %v3696_v6 = vmul.f32 %v3694_v12, %v3690_v43 }
0x202f   :  { %v3695_v52 = vmul.f32 %v3694_v12, %v3689_v20 }
0x2030   :  { %v3702_v0 = vadd.f32 %v3700_v8, %v3696_v6 }
0x2031   :  { %v3701_v57 = vadd.f32 %v3700_v8, %v3695_v52 }
0x2032   :  { %3704 = vst.msk [vmem:[#allocation7 + $0x8] sm:$0xff] %vm96_vm0, %v3702_v0 }
0x2033   :  { %3703 = vst.msk [vmem:[#allocation7] sm:$0xff] %vm96_vm0, %v3701_v57 }
0x2034   :  { %4394 = shalt.err (!%p4391_p6)
}
0x2035   :  { %s4395_s5 = scalar_lea.hbm %s5003_s3, 256 }
0x2036   :  { %p4396_p7 = scmp.ne.s32.totalorder %s5003_s3, %s4395_s5  ;;  %p4399_p8 = scmp.lt.u32.totalorder %s4395_s5, %s5003_s3 }
0x2038   :  { %p4401_p9 = pnand %p4399_p8, %p4396_p7 }
0x203a   :  { %4404 = shalt.err (!%p4401_p9)
}
0x203b   :  { %3716 = dma.vmem_to_hbm [thread:$0]  %s3711_s28, 256, %s5003_s3, [#allocation4], %s4412_s22, %s4412_s22, %s4413_s23  }
0x203c   :  { %4409 = dma.done.wait [#allocation4], 256  }
0x203d   :  { %4410 = vsyncadd [#allocation4], 4294967040 }
0x203e   :  { %3720 = vsyncpa [#allocation3], 1 }
0x203f   :  { %3721 = vsyncpa [#allocation6], 1 }
0x2040   :  { %3722 = vsyncpa [#allocation4], 1 }

</bundles_post_ra>
